<compile_context>
chip_gen: v7x
topology: tpu7x:2x2x1
jax: 0.10.0
libtpu: 0.0.40
codegen_flags: <defaults>
</compile_context>

<pallas_src>
import numpy as np
import jax
import jax.numpy as jnp
from jax.experimental import pallas as pl
from jax.experimental.pallas import tpu as pltpu


# -----------------------------------------------------------------------------
# Pallas kernel: cos time-encoding -> masked GRU recurrence -> output Linear.
# Single program (no grid); total VMEM footprint ~250 KB.
# -----------------------------------------------------------------------------
def time_encode_kernel(
    ts_ref,     # (T*B, 128) f32  time-major pad_ts broadcast across lanes
    rs_ref,     # (B, 128)   f32  rs zero-padded to 128 lanes
    const_ref,  # (B+4, 128) f32  rows 0:B lengths (bcast); then freq, phase,
                #                 b_hn, b_c (each zero-padded to 128 lanes)
    wih_ref,    # (2, 128, 3*128) bf16  [W_i fused+padded (+bias row D),
                #                        W_h fused+padded]   (x @ W layout)
    wc_ref,     # (2, 128, D)     bf16  [Wc_rs padded, Wc_h padded]
    out_ref,    # (B, D)     f32
):
    TB, DP = ts_ref.shape                 # DP == 128 (per-gate padded width)
    B, D = out_ref.shape
    T = TB // B
    G = DP                                # lane width of one gate block

    lens = const_ref[0:B, :]              # (B, 128) f32 lengths (broadcast)
    freq = const_ref[B:B + 1, :]          # (1, 128)
    phase = const_ref[B + 1:B + 2, :]     # (1, 128)
    b_hn = jnp.broadcast_to(const_ref[B + 2:B + 3, :], (B, DP))   # hoisted
    b_c = const_ref[B + 3:B + 4, :][:, :D]                        # (1, D)

    w_i = wih_ref[0]                      # (128, 384) bf16
    w_h = wih_ref[1]                      # (128, 384) bf16

    # ---- Input-side work hoisted off the serial path: one lane-dense matmul
    # projects every (t, b) harmonic through all three gates.  Padding lanes
    # D:128 of `harmonic` are exactly cos(0) = 1.0 (freq/phase padding is 0),
    # so w_i's row D carries the fused input-side biases [b_r | b_z | b_in]
    # and the bias add comes for free out of the MXU.
    harmonic = jnp.cos(ts_ref[...] * freq + phase)                   # (T*B, 128)
    xp = jnp.dot(harmonic.astype(jnp.bfloat16), w_i,
                 preferred_element_type=jnp.float32)                 # (T*B, 384)

    # ---- Serial GRU recurrence, fully unrolled (T small & static).  One
    # (B,128)x(128,384) matmul + gate math per step; every slice below is
    # 128-lane aligned.  Masked steps (t >= length[b]) run but are frozen by
    # the select (exact pack_padded_sequence semantics).
    h = jnp.zeros((B, DP), jnp.float32)
    for t in range(T):
        x = xp[t * B:(t + 1) * B, :]                                 # (B, 384)
        hp = jnp.dot(h.astype(jnp.bfloat16), w_h,
                     preferred_element_type=jnp.float32)             # (B, 384)
        # r and z share one fused (B, 256) sigmoid launch (single EUP push).
        rz = jax.nn.sigmoid(x[:, :2 * G] + hp[:, :2 * G])
        r = rz[:, :G]
        z = rz[:, G:]
        n = jnp.tanh(x[:, 2 * G:] + r * (hp[:, 2 * G:] + b_hn))
        h_new = (1.0 - z) * n + z * h
        h = jnp.where(float(t) < lens, h_new, h)

    # comb(concat(rs, h)) == rs @ Wc_rs + h @ Wc_h + b_c
    # (both weight slabs zero-padded to 128 rows, so no lane-slice of h).
    out_ref[...] = (
        jnp.dot(rs_ref[...].astype(jnp.bfloat16), wc_ref[0],
                preferred_element_type=jnp.float32)
        + jnp.dot(h.astype(jnp.bfloat16), wc_ref[1],
                  preferred_element_type=jnp.float32)
        + b_c)


def time_encode_pallas(rs, pad_ts, length, params):
    """rs: (B, D) f32, pad_ts: (B, T) f32, length: (B,) int32."""
    B, D = rs.shape
    T = pad_ts.shape[1]
    DP = 128                      # padded hidden / per-gate lane width
    assert D <= DP
    f32 = jnp.float32

    # -------- layout plumbing (would be precomputed once in production) -----
    # Timestamps: time-major, lane-dense (one contiguous DMA burst).
    ts_b = jnp.broadcast_to(
        jnp.transpose(pad_ts).astype(f32).reshape(T * B, 1), (T * B, DP))

    # rs zero-padded to 128 lanes (padding lanes hit zero weight rows).
    rs_p = jnp.zeros((B, DP), f32).at[:, :D].set(rs.astype(f32))

    # Small f32 const slab: lengths (bcast rows) + freq/phase/b_hn/b_c rows.
    def pad_row(v):
        return jnp.zeros((DP,), f32).at[:D].set(v.astype(f32))

    const = jnp.concatenate(
        [jnp.broadcast_to(length.astype(f32)[:, None], (B, DP)),
         pad_row(params["freq"])[None, :],
         pad_row(params["phase"])[None, :],
         pad_row(params["b_hn"])[None, :],
         pad_row(params["b_c"])[None, :]],
        axis=0)                                                   # (B+4, 128)

    # Gate-fused, 128-lane-padded weights (PyTorch gate order [r, z, n]).
    # Input-side block g: rows 0:D = W_i[g], row D = bias[g] (augmented-bias
    # row hit by harmonic's constant-1 padding lane), rows D+1: = 0.
    def gate_block_i(w, b):
        blk = jnp.zeros((DP, DP), f32)
        blk = blk.at[:D, :D].set(w.astype(f32))
        blk = blk.at[D, :D].set(b.astype(f32))
        return blk

    def gate_block_h(w):
        return jnp.zeros((DP, DP), f32).at[:D, :D].set(w.astype(f32))

    wi_p = jnp.concatenate(
        [gate_block_i(params["w_ir"], params["b_r"]),
         gate_block_i(params["w_iz"], params["b_z"]),
         gate_block_i(params["w_in"], params["b_in"])], axis=1)   # (128, 384)
    wh_p = jnp.concatenate(
        [gate_block_h(params["w_hr"]),
         gate_block_h(params["w_hz"]),
         gate_block_h(params["w_hn"])], axis=1)                   # (128, 384)
    wih = jnp.stack([wi_p, wh_p]).astype(jnp.bfloat16)            # (2, 128, 384)

    wc_rs_p = jnp.zeros((DP, D), f32).at[:D, :].set(params["wc_rs"].astype(f32))
    wc_h_p = jnp.zeros((DP, D), f32).at[:D, :].set(params["wc_h"].astype(f32))
    wc = jnp.stack([wc_rs_p, wc_h_p]).astype(jnp.bfloat16)        # (2, 128, D)

    inputs = (ts_b, rs_p, const, wih, wc)

    # TODO(synk): if this kernel is ever batched up, make the output last dim
    # a multiple of 128 (fold heads/batch into lanes) to avoid masked stores.
    return pl.pallas_call(
        time_encode_kernel,
        out_shape=jax.ShapeDtypeStruct((B, D), f32),
        in_specs=[pl.BlockSpec(memory_space=pltpu.MemorySpace.VMEM)] * len(inputs),
        out_specs=pl.BlockSpec(memory_space=pltpu.MemorySpace.VMEM),
    )(*inputs)


# -----------------------------------------------------------------------------
# Pure-JAX f32 reference (same math, unfused/unpadded params) for sanity check.
# -----------------------------------------------------------------------------
def time_encode_ref(rs, pad_ts, length, p):
    B, T = pad_ts.shape
    D = rs.shape[1]
    harmonic = jnp.cos(pad_ts[:, :, None] * p["freq"][None, None, :]
                       + p["phase"][None, None, :])               # (B, T, D)
    h = jnp.zeros((B, D), jnp.float32)
    for t in range(T):
        x = harmonic[:, t, :]
        r = jax.nn.sigmoid(x @ p["w_ir"] + h @ p["w_hr"] + p["b_r"])
        z = jax.nn.sigmoid(x @ p["w_iz"] + h @ p["w_hz"] + p["b_z"])
        n = jnp.tanh(x @ p["w_in"] + p["b_in"] + r * (h @ p["w_hn"] + p["b_hn"]))
        h_new = (1.0 - z) * n + z * h
        h = jnp.where(t < length[:, None], h_new, h)
    return rs @ p["wc_rs"] + h @ p["wc_h"] + p["b_c"][None, :]


# -----------------------------------------------------------------------------
# Deterministic synthetic parameters (shapes from TimeEncode.__init__).
# -----------------------------------------------------------------------------
def make_params(key, time_dim):
    D = time_dim
    bound = 1.0 / np.sqrt(D)
    keys = jax.random.split(key, 16)

    def u(k, shape):
        return jax.random.uniform(k, shape, jnp.float32, -bound, bound)

    return dict(
        # TimeEncode params
        freq=(1.0 / 10.0 ** jnp.linspace(0.0, 9.0, D)).astype(jnp.float32),
        phase=jnp.zeros((D,), jnp.float32),
        # GRU(time_dim, time_dim): weight_ih/hh (3D, D) split per gate and
        # pre-transposed to (D, D); PyTorch gate order [r, z, n].
        w_ir=u(keys[0], (D, D)), w_iz=u(keys[1], (D, D)), w_in=u(keys[2], (D, D)),
        w_hr=u(keys[3], (D, D)), w_hz=u(keys[4], (D, D)), w_hn=u(keys[5], (D, D)),
        # b_r = b_ir + b_hr, b_z = b_iz + b_hz (fused); b_in / b_hn kept split
        # because b_hn sits inside r * (...).
        b_r=u(keys[6], (D,)), b_z=u(keys[7], (D,)),
        b_in=u(keys[8], (D,)), b_hn=u(keys[9], (D,)),
        # comb: Linear(2D -> D) split into the rs-half and the h-half.
        wc_rs=u(keys[10], (D, D)), wc_h=u(keys[11], (D, D)),
        b_c=u(keys[12], (D,)),
    )


if __name__ == "__main__":
    key = jax.random.PRNGKey(0)
    B, T, D = 8, 8, 32   # batch, padded seq length, time_dim (expand_dim)

    k_p, k_rs, k_ts, k_len = jax.random.split(key, 4)
    params = make_params(k_p, D)

    rs = jax.random.normal(k_rs, (B, D), jnp.float32)
    pad_ts = jax.random.uniform(k_ts, (B, T), jnp.float32, 0.0, 100.0)
    length = jax.random.randint(k_len, (B,), 1, T + 1).astype(jnp.int32)

    out = time_encode_pallas(rs, pad_ts, length, params)
    out = jax.block_until_ready(out)

    ref = time_encode_ref(rs, pad_ts, length, params)
    np.testing.assert_allclose(np.asarray(out), np.asarray(ref),
                               rtol=2e-2, atol=2e-2)

    print("KERNEL_OK")
</pallas_src>

<mosaic_0001>
module attributes {stable_mosaic.version = 11 : i64} {
  func.func @time_encode_kernel(%arg0: memref<64x128xf32, #tpu.memory_space<vmem>>, %arg1: memref<8x128xf32, #tpu.memory_space<vmem>>, %arg2: memref<12x128xf32, #tpu.memory_space<vmem>>, %arg3: memref<2x128x384xbf16, #tpu.memory_space<vmem>>, %arg4: memref<2x128x32xbf16, #tpu.memory_space<vmem>>, %arg5: memref<8x32xf32, #tpu.memory_space<vmem>>) attributes {dimension_semantics = [], scalar_prefetch = 0 : i64, scratch_operands = 0 : i64, tpu.core_type = #tpu.core_type<tc>} {
    %c0 = arith.constant 0 : index
    %c0_0 = arith.constant 0 : index
    %0 = vector.load %arg2[%c0, %c0_0] : memref<12x128xf32, #tpu.memory_space<vmem>>, vector<8x128xf32>
    %c8 = arith.constant 8 : index
    %c0_1 = arith.constant 0 : index
    %1 = vector.load %arg2[%c8, %c0_1] : memref<12x128xf32, #tpu.memory_space<vmem>>, vector<1x128xf32>
    %c9 = arith.constant 9 : index
    %c0_2 = arith.constant 0 : index
    %2 = vector.load %arg2[%c9, %c0_2] : memref<12x128xf32, #tpu.memory_space<vmem>>, vector<1x128xf32>
    %c10 = arith.constant 10 : index
    %c0_3 = arith.constant 0 : index
    %3 = vector.load %arg2[%c10, %c0_3] : memref<12x128xf32, #tpu.memory_space<vmem>>, vector<1x128xf32>
    %4 = vector.shape_cast %3 : vector<1x128xf32> to vector<1x128xf32>
    %5 = vector.broadcast %4 : vector<1x128xf32> to vector<8x128xf32>
    %c11 = arith.constant 11 : index
    %c0_4 = arith.constant 0 : index
    %6 = vector.load %arg2[%c11, %c0_4] : memref<12x128xf32, #tpu.memory_space<vmem>>, vector<1x128xf32>
    %7 = vector.extract_strided_slice %6 {offsets = [0, 0], sizes = [1, 32], strides = [1, 1]} : vector<1x128xf32> to vector<1x32xf32>
    %c0_5 = arith.constant 0 : index
    %c0_6 = arith.constant 0 : index
    %c0_7 = arith.constant 0 : index
    %8 = vector.load %arg3[%c0_5, %c0_6, %c0_7] : memref<2x128x384xbf16, #tpu.memory_space<vmem>>, vector<1x128x384xbf16>
    %9 = vector.shape_cast %8 : vector<1x128x384xbf16> to vector<128x384xbf16>
    %c1 = arith.constant 1 : index
    %c0_8 = arith.constant 0 : index
    %c0_9 = arith.constant 0 : index
    %10 = vector.load %arg3[%c1, %c0_8, %c0_9] : memref<2x128x384xbf16, #tpu.memory_space<vmem>>, vector<1x128x384xbf16>
    %11 = vector.shape_cast %10 : vector<1x128x384xbf16> to vector<128x384xbf16>
    %c0_10 = arith.constant 0 : index
    %c0_11 = arith.constant 0 : index
    %12 = vector.load %arg0[%c0_10, %c0_11] : memref<64x128xf32, #tpu.memory_space<vmem>>, vector<64x128xf32>
    %13 = vector.broadcast %1 : vector<1x128xf32> to vector<64x128xf32>
    %14 = arith.mulf %12, %13 : vector<64x128xf32>
    %15 = vector.broadcast %2 : vector<1x128xf32> to vector<64x128xf32>
    %16 = arith.addf %14, %15 : vector<64x128xf32>
    %17 = math.cos %16 : vector<64x128xf32>
    %18 = arith.truncf %17 : vector<64x128xf32> to vector<64x128xbf16>
    %cst = arith.constant dense<0.000000e+00> : vector<64x384xf32>
    %19 = tpu.matmul %18, %9, %cst {dimension_numbers = #tpu.dot_dimension_numbers<[1], [0], [0], [1], [0, 0, 1, 1], [], []>} : vector<64x128xbf16>, vector<128x384xbf16>, vector<64x384xf32> -> vector<64x384xf32>
    %cst_12 = arith.constant 0.000000e+00 : f32
    %20 = vector.broadcast %cst_12 : f32 to vector<8x128xf32>
    %21 = vector.extract_strided_slice %19 {offsets = [0, 0], sizes = [8, 384], strides = [1, 1]} : vector<64x384xf32> to vector<8x384xf32>
    %22 = arith.truncf %20 : vector<8x128xf32> to vector<8x128xbf16>
    %cst_13 = arith.constant dense<0.000000e+00> : vector<8x384xf32>
    %23 = tpu.matmul %22, %11, %cst_13 {dimension_numbers = #tpu.dot_dimension_numbers<[1], [0], [0], [1], [0, 0, 1, 1], [], []>} : vector<8x128xbf16>, vector<128x384xbf16>, vector<8x384xf32> -> vector<8x384xf32>
    %24 = vector.extract_strided_slice %21 {offsets = [0, 0], sizes = [8, 256], strides = [1, 1]} : vector<8x384xf32> to vector<8x256xf32>
    %25 = vector.extract_strided_slice %23 {offsets = [0, 0], sizes = [8, 256], strides = [1, 1]} : vector<8x384xf32> to vector<8x256xf32>
    %26 = arith.addf %24, %25 : vector<8x256xf32>
    %27 = arith.negf %26 : vector<8x256xf32>
    %28 = math.exp %27 : vector<8x256xf32>
    %cst_14 = arith.constant 1.000000e+00 : f32
    %29 = vector.broadcast %cst_14 : f32 to vector<8x256xf32>
    %30 = arith.addf %29, %28 : vector<8x256xf32>
    %31 = arith.divf %29, %30 : vector<8x256xf32>
    %32 = vector.extract_strided_slice %31 {offsets = [0, 0], sizes = [8, 128], strides = [1, 1]} : vector<8x256xf32> to vector<8x128xf32>
    %33 = vector.extract_strided_slice %31 {offsets = [0, 128], sizes = [8, 128], strides = [1, 1]} : vector<8x256xf32> to vector<8x128xf32>
    %34 = vector.extract_strided_slice %21 {offsets = [0, 256], sizes = [8, 128], strides = [1, 1]} : vector<8x384xf32> to vector<8x128xf32>
    %35 = vector.extract_strided_slice %23 {offsets = [0, 256], sizes = [8, 128], strides = [1, 1]} : vector<8x384xf32> to vector<8x128xf32>
    %36 = arith.addf %35, %5 : vector<8x128xf32>
    %37 = arith.mulf %32, %36 : vector<8x128xf32>
    %38 = arith.addf %34, %37 : vector<8x128xf32>
    %39 = math.tanh %38 : vector<8x128xf32>
    %cst_15 = arith.constant 1.000000e+00 : f32
    %40 = vector.broadcast %cst_15 : f32 to vector<8x128xf32>
    %41 = arith.subf %40, %33 : vector<8x128xf32>
    %42 = arith.mulf %41, %39 : vector<8x128xf32>
    %43 = arith.mulf %33, %20 : vector<8x128xf32>
    %44 = arith.addf %42, %43 : vector<8x128xf32>
    %cst_16 = arith.constant 0.000000e+00 : f32
    %45 = vector.broadcast %cst_16 : f32 to vector<8x128xf32>
    %46 = arith.cmpf ogt, %0, %45 : vector<8x128xf32>
    %47 = arith.select %46, %44, %20 : vector<8x128xi1>, vector<8x128xf32>
    %48 = vector.extract_strided_slice %19 {offsets = [8, 0], sizes = [8, 384], strides = [1, 1]} : vector<64x384xf32> to vector<8x384xf32>
    %49 = arith.truncf %47 : vector<8x128xf32> to vector<8x128xbf16>
    %cst_17 = arith.constant dense<0.000000e+00> : vector<8x384xf32>
    %50 = tpu.matmul %49, %11, %cst_17 {dimension_numbers = #tpu.dot_dimension_numbers<[1], [0], [0], [1], [0, 0, 1, 1], [], []>} : vector<8x128xbf16>, vector<128x384xbf16>, vector<8x384xf32> -> vector<8x384xf32>
    %51 = vector.extract_strided_slice %48 {offsets = [0, 0], sizes = [8, 256], strides = [1, 1]} : vector<8x384xf32> to vector<8x256xf32>
    %52 = vector.extract_strided_slice %50 {offsets = [0, 0], sizes = [8, 256], strides = [1, 1]} : vector<8x384xf32> to vector<8x256xf32>
    %53 = arith.addf %51, %52 : vector<8x256xf32>
    %54 = arith.negf %53 : vector<8x256xf32>
    %55 = math.exp %54 : vector<8x256xf32>
    %cst_18 = arith.constant 1.000000e+00 : f32
    %56 = vector.broadcast %cst_18 : f32 to vector<8x256xf32>
    %57 = arith.addf %56, %55 : vector<8x256xf32>
    %58 = arith.divf %56, %57 : vector<8x256xf32>
    %59 = vector.extract_strided_slice %58 {offsets = [0, 0], sizes = [8, 128], strides = [1, 1]} : vector<8x256xf32> to vector<8x128xf32>
    %60 = vector.extract_strided_slice %58 {offsets = [0, 128], sizes = [8, 128], strides = [1, 1]} : vector<8x256xf32> to vector<8x128xf32>
    %61 = vector.extract_strided_slice %48 {offsets = [0, 256], sizes = [8, 128], strides = [1, 1]} : vector<8x384xf32> to vector<8x128xf32>
    %62 = vector.extract_strided_slice %50 {offsets = [0, 256], sizes = [8, 128], strides = [1, 1]} : vector<8x384xf32> to vector<8x128xf32>
    %63 = arith.addf %62, %5 : vector<8x128xf32>
    %64 = arith.mulf %59, %63 : vector<8x128xf32>
    %65 = arith.addf %61, %64 : vector<8x128xf32>
    %66 = math.tanh %65 : vector<8x128xf32>
    %cst_19 = arith.constant 1.000000e+00 : f32
    %67 = vector.broadcast %cst_19 : f32 to vector<8x128xf32>
    %68 = arith.subf %67, %60 : vector<8x128xf32>
    %69 = arith.mulf %68, %66 : vector<8x128xf32>
    %70 = arith.mulf %60, %47 : vector<8x128xf32>
    %71 = arith.addf %69, %70 : vector<8x128xf32>
    %cst_20 = arith.constant 1.000000e+00 : f32
    %72 = vector.broadcast %cst_20 : f32 to vector<8x128xf32>
    %73 = arith.cmpf ogt, %0, %72 : vector<8x128xf32>
    %74 = arith.select %73, %71, %47 : vector<8x128xi1>, vector<8x128xf32>
    %75 = vector.extract_strided_slice %19 {offsets = [16, 0], sizes = [8, 384], strides = [1, 1]} : vector<64x384xf32> to vector<8x384xf32>
    %76 = arith.truncf %74 : vector<8x128xf32> to vector<8x128xbf16>
    %cst_21 = arith.constant dense<0.000000e+00> : vector<8x384xf32>
    %77 = tpu.matmul %76, %11, %cst_21 {dimension_numbers = #tpu.dot_dimension_numbers<[1], [0], [0], [1], [0, 0, 1, 1], [], []>} : vector<8x128xbf16>, vector<128x384xbf16>, vector<8x384xf32> -> vector<8x384xf32>
    %78 = vector.extract_strided_slice %75 {offsets = [0, 0], sizes = [8, 256], strides = [1, 1]} : vector<8x384xf32> to vector<8x256xf32>
    %79 = vector.extract_strided_slice %77 {offsets = [0, 0], sizes = [8, 256], strides = [1, 1]} : vector<8x384xf32> to vector<8x256xf32>
    %80 = arith.addf %78, %79 : vector<8x256xf32>
    %81 = arith.negf %80 : vector<8x256xf32>
    %82 = math.exp %81 : vector<8x256xf32>
    %cst_22 = arith.constant 1.000000e+00 : f32
    %83 = vector.broadcast %cst_22 : f32 to vector<8x256xf32>
    %84 = arith.addf %83, %82 : vector<8x256xf32>
    %85 = arith.divf %83, %84 : vector<8x256xf32>
    %86 = vector.extract_strided_slice %85 {offsets = [0, 0], sizes = [8, 128], strides = [1, 1]} : vector<8x256xf32> to vector<8x128xf32>
    %87 = vector.extract_strided_slice %85 {offsets = [0, 128], sizes = [8, 128], strides = [1, 1]} : vector<8x256xf32> to vector<8x128xf32>
    %88 = vector.extract_strided_slice %75 {offsets = [0, 256], sizes = [8, 128], strides = [1, 1]} : vector<8x384xf32> to vector<8x128xf32>
    %89 = vector.extract_strided_slice %77 {offsets = [0, 256], sizes = [8, 128], strides = [1, 1]} : vector<8x384xf32> to vector<8x128xf32>
    %90 = arith.addf %89, %5 : vector<8x128xf32>
    %91 = arith.mulf %86, %90 : vector<8x128xf32>
    %92 = arith.addf %88, %91 : vector<8x128xf32>
    %93 = math.tanh %92 : vector<8x128xf32>
    %cst_23 = arith.constant 1.000000e+00 : f32
    %94 = vector.broadcast %cst_23 : f32 to vector<8x128xf32>
    %95 = arith.subf %94, %87 : vector<8x128xf32>
    %96 = arith.mulf %95, %93 : vector<8x128xf32>
    %97 = arith.mulf %87, %74 : vector<8x128xf32>
    %98 = arith.addf %96, %97 : vector<8x128xf32>
    %cst_24 = arith.constant 2.000000e+00 : f32
    %99 = vector.broadcast %cst_24 : f32 to vector<8x128xf32>
    %100 = arith.cmpf ogt, %0, %99 : vector<8x128xf32>
    %101 = arith.select %100, %98, %74 : vector<8x128xi1>, vector<8x128xf32>
    %102 = vector.extract_strided_slice %19 {offsets = [24, 0], sizes = [8, 384], strides = [1, 1]} : vector<64x384xf32> to vector<8x384xf32>
    %103 = arith.truncf %101 : vector<8x128xf32> to vector<8x128xbf16>
    %cst_25 = arith.constant dense<0.000000e+00> : vector<8x384xf32>
    %104 = tpu.matmul %103, %11, %cst_25 {dimension_numbers = #tpu.dot_dimension_numbers<[1], [0], [0], [1], [0, 0, 1, 1], [], []>} : vector<8x128xbf16>, vector<128x384xbf16>, vector<8x384xf32> -> vector<8x384xf32>
    %105 = vector.extract_strided_slice %102 {offsets = [0, 0], sizes = [8, 256], strides = [1, 1]} : vector<8x384xf32> to vector<8x256xf32>
    %106 = vector.extract_strided_slice %104 {offsets = [0, 0], sizes = [8, 256], strides = [1, 1]} : vector<8x384xf32> to vector<8x256xf32>
    %107 = arith.addf %105, %106 : vector<8x256xf32>
    %108 = arith.negf %107 : vector<8x256xf32>
    %109 = math.exp %108 : vector<8x256xf32>
    %cst_26 = arith.constant 1.000000e+00 : f32
    %110 = vector.broadcast %cst_26 : f32 to vector<8x256xf32>
    %111 = arith.addf %110, %109 : vector<8x256xf32>
    %112 = arith.divf %110, %111 : vector<8x256xf32>
    %113 = vector.extract_strided_slice %112 {offsets = [0, 0], sizes = [8, 128], strides = [1, 1]} : vector<8x256xf32> to vector<8x128xf32>
    %114 = vector.extract_strided_slice %112 {offsets = [0, 128], sizes = [8, 128], strides = [1, 1]} : vector<8x256xf32> to vector<8x128xf32>
    %115 = vector.extract_strided_slice %102 {offsets = [0, 256], sizes = [8, 128], strides = [1, 1]} : vector<8x384xf32> to vector<8x128xf32>
    %116 = vector.extract_strided_slice %104 {offsets = [0, 256], sizes = [8, 128], strides = [1, 1]} : vector<8x384xf32> to vector<8x128xf32>
    %117 = arith.addf %116, %5 : vector<8x128xf32>
    %118 = arith.mulf %113, %117 : vector<8x128xf32>
    %119 = arith.addf %115, %118 : vector<8x128xf32>
    %120 = math.tanh %119 : vector<8x128xf32>
    %cst_27 = arith.constant 1.000000e+00 : f32
    %121 = vector.broadcast %cst_27 : f32 to vector<8x128xf32>
    %122 = arith.subf %121, %114 : vector<8x128xf32>
    %123 = arith.mulf %122, %120 : vector<8x128xf32>
    %124 = arith.mulf %114, %101 : vector<8x128xf32>
    %125 = arith.addf %123, %124 : vector<8x128xf32>
    %cst_28 = arith.constant 3.000000e+00 : f32
    %126 = vector.broadcast %cst_28 : f32 to vector<8x128xf32>
    %127 = arith.cmpf ogt, %0, %126 : vector<8x128xf32>
    %128 = arith.select %127, %125, %101 : vector<8x128xi1>, vector<8x128xf32>
    %129 = vector.extract_strided_slice %19 {offsets = [32, 0], sizes = [8, 384], strides = [1, 1]} : vector<64x384xf32> to vector<8x384xf32>
    %130 = arith.truncf %128 : vector<8x128xf32> to vector<8x128xbf16>
    %cst_29 = arith.constant dense<0.000000e+00> : vector<8x384xf32>
    %131 = tpu.matmul %130, %11, %cst_29 {dimension_numbers = #tpu.dot_dimension_numbers<[1], [0], [0], [1], [0, 0, 1, 1], [], []>} : vector<8x128xbf16>, vector<128x384xbf16>, vector<8x384xf32> -> vector<8x384xf32>
    %132 = vector.extract_strided_slice %129 {offsets = [0, 0], sizes = [8, 256], strides = [1, 1]} : vector<8x384xf32> to vector<8x256xf32>
    %133 = vector.extract_strided_slice %131 {offsets = [0, 0], sizes = [8, 256], strides = [1, 1]} : vector<8x384xf32> to vector<8x256xf32>
    %134 = arith.addf %132, %133 : vector<8x256xf32>
    %135 = arith.negf %134 : vector<8x256xf32>
    %136 = math.exp %135 : vector<8x256xf32>
    %cst_30 = arith.constant 1.000000e+00 : f32
    %137 = vector.broadcast %cst_30 : f32 to vector<8x256xf32>
    %138 = arith.addf %137, %136 : vector<8x256xf32>
    %139 = arith.divf %137, %138 : vector<8x256xf32>
    %140 = vector.extract_strided_slice %139 {offsets = [0, 0], sizes = [8, 128], strides = [1, 1]} : vector<8x256xf32> to vector<8x128xf32>
    %141 = vector.extract_strided_slice %139 {offsets = [0, 128], sizes = [8, 128], strides = [1, 1]} : vector<8x256xf32> to vector<8x128xf32>
    %142 = vector.extract_strided_slice %129 {offsets = [0, 256], sizes = [8, 128], strides = [1, 1]} : vector<8x384xf32> to vector<8x128xf32>
    %143 = vector.extract_strided_slice %131 {offsets = [0, 256], sizes = [8, 128], strides = [1, 1]} : vector<8x384xf32> to vector<8x128xf32>
    %144 = arith.addf %143, %5 : vector<8x128xf32>
    %145 = arith.mulf %140, %144 : vector<8x128xf32>
    %146 = arith.addf %142, %145 : vector<8x128xf32>
    %147 = math.tanh %146 : vector<8x128xf32>
    %cst_31 = arith.constant 1.000000e+00 : f32
    %148 = vector.broadcast %cst_31 : f32 to vector<8x128xf32>
    %149 = arith.subf %148, %141 : vector<8x128xf32>
    %150 = arith.mulf %149, %147 : vector<8x128xf32>
    %151 = arith.mulf %141, %128 : vector<8x128xf32>
    %152 = arith.addf %150, %151 : vector<8x128xf32>
    %cst_32 = arith.constant 4.000000e+00 : f32
    %153 = vector.broadcast %cst_32 : f32 to vector<8x128xf32>
    %154 = arith.cmpf ogt, %0, %153 : vector<8x128xf32>
    %155 = arith.select %154, %152, %128 : vector<8x128xi1>, vector<8x128xf32>
    %156 = vector.extract_strided_slice %19 {offsets = [40, 0], sizes = [8, 384], strides = [1, 1]} : vector<64x384xf32> to vector<8x384xf32>
    %157 = arith.truncf %155 : vector<8x128xf32> to vector<8x128xbf16>
    %cst_33 = arith.constant dense<0.000000e+00> : vector<8x384xf32>
    %158 = tpu.matmul %157, %11, %cst_33 {dimension_numbers = #tpu.dot_dimension_numbers<[1], [0], [0], [1], [0, 0, 1, 1], [], []>} : vector<8x128xbf16>, vector<128x384xbf16>, vector<8x384xf32> -> vector<8x384xf32>
    %159 = vector.extract_strided_slice %156 {offsets = [0, 0], sizes = [8, 256], strides = [1, 1]} : vector<8x384xf32> to vector<8x256xf32>
    %160 = vector.extract_strided_slice %158 {offsets = [0, 0], sizes = [8, 256], strides = [1, 1]} : vector<8x384xf32> to vector<8x256xf32>
    %161 = arith.addf %159, %160 : vector<8x256xf32>
    %162 = arith.negf %161 : vector<8x256xf32>
    %163 = math.exp %162 : vector<8x256xf32>
    %cst_34 = arith.constant 1.000000e+00 : f32
    %164 = vector.broadcast %cst_34 : f32 to vector<8x256xf32>
    %165 = arith.addf %164, %163 : vector<8x256xf32>
    %166 = arith.divf %164, %165 : vector<8x256xf32>
    %167 = vector.extract_strided_slice %166 {offsets = [0, 0], sizes = [8, 128], strides = [1, 1]} : vector<8x256xf32> to vector<8x128xf32>
    %168 = vector.extract_strided_slice %166 {offsets = [0, 128], sizes = [8, 128], strides = [1, 1]} : vector<8x256xf32> to vector<8x128xf32>
    %169 = vector.extract_strided_slice %156 {offsets = [0, 256], sizes = [8, 128], strides = [1, 1]} : vector<8x384xf32> to vector<8x128xf32>
    %170 = vector.extract_strided_slice %158 {offsets = [0, 256], sizes = [8, 128], strides = [1, 1]} : vector<8x384xf32> to vector<8x128xf32>
    %171 = arith.addf %170, %5 : vector<8x128xf32>
    %172 = arith.mulf %167, %171 : vector<8x128xf32>
    %173 = arith.addf %169, %172 : vector<8x128xf32>
    %174 = math.tanh %173 : vector<8x128xf32>
    %cst_35 = arith.constant 1.000000e+00 : f32
    %175 = vector.broadcast %cst_35 : f32 to vector<8x128xf32>
    %176 = arith.subf %175, %168 : vector<8x128xf32>
    %177 = arith.mulf %176, %174 : vector<8x128xf32>
    %178 = arith.mulf %168, %155 : vector<8x128xf32>
    %179 = arith.addf %177, %178 : vector<8x128xf32>
    %cst_36 = arith.constant 5.000000e+00 : f32
    %180 = vector.broadcast %cst_36 : f32 to vector<8x128xf32>
    %181 = arith.cmpf ogt, %0, %180 : vector<8x128xf32>
    %182 = arith.select %181, %179, %155 : vector<8x128xi1>, vector<8x128xf32>
    %183 = vector.extract_strided_slice %19 {offsets = [48, 0], sizes = [8, 384], strides = [1, 1]} : vector<64x384xf32> to vector<8x384xf32>
    %184 = arith.truncf %182 : vector<8x128xf32> to vector<8x128xbf16>
    %cst_37 = arith.constant dense<0.000000e+00> : vector<8x384xf32>
    %185 = tpu.matmul %184, %11, %cst_37 {dimension_numbers = #tpu.dot_dimension_numbers<[1], [0], [0], [1], [0, 0, 1, 1], [], []>} : vector<8x128xbf16>, vector<128x384xbf16>, vector<8x384xf32> -> vector<8x384xf32>
    %186 = vector.extract_strided_slice %183 {offsets = [0, 0], sizes = [8, 256], strides = [1, 1]} : vector<8x384xf32> to vector<8x256xf32>
    %187 = vector.extract_strided_slice %185 {offsets = [0, 0], sizes = [8, 256], strides = [1, 1]} : vector<8x384xf32> to vector<8x256xf32>
    %188 = arith.addf %186, %187 : vector<8x256xf32>
    %189 = arith.negf %188 : vector<8x256xf32>
    %190 = math.exp %189 : vector<8x256xf32>
    %cst_38 = arith.constant 1.000000e+00 : f32
    %191 = vector.broadcast %cst_38 : f32 to vector<8x256xf32>
    %192 = arith.addf %191, %190 : vector<8x256xf32>
    %193 = arith.divf %191, %192 : vector<8x256xf32>
    %194 = vector.extract_strided_slice %193 {offsets = [0, 0], sizes = [8, 128], strides = [1, 1]} : vector<8x256xf32> to vector<8x128xf32>
    %195 = vector.extract_strided_slice %193 {offsets = [0, 128], sizes = [8, 128], strides = [1, 1]} : vector<8x256xf32> to vector<8x128xf32>
    %196 = vector.extract_strided_slice %183 {offsets = [0, 256], sizes = [8, 128], strides = [1, 1]} : vector<8x384xf32> to vector<8x128xf32>
    %197 = vector.extract_strided_slice %185 {offsets = [0, 256], sizes = [8, 128], strides = [1, 1]} : vector<8x384xf32> to vector<8x128xf32>
    %198 = arith.addf %197, %5 : vector<8x128xf32>
    %199 = arith.mulf %194, %198 : vector<8x128xf32>
    %200 = arith.addf %196, %199 : vector<8x128xf32>
    %201 = math.tanh %200 : vector<8x128xf32>
    %cst_39 = arith.constant 1.000000e+00 : f32
    %202 = vector.broadcast %cst_39 : f32 to vector<8x128xf32>
    %203 = arith.subf %202, %195 : vector<8x128xf32>
    %204 = arith.mulf %203, %201 : vector<8x128xf32>
    %205 = arith.mulf %195, %182 : vector<8x128xf32>
    %206 = arith.addf %204, %205 : vector<8x128xf32>
    %cst_40 = arith.constant 6.000000e+00 : f32
    %207 = vector.broadcast %cst_40 : f32 to vector<8x128xf32>
    %208 = arith.cmpf ogt, %0, %207 : vector<8x128xf32>
    %209 = arith.select %208, %206, %182 : vector<8x128xi1>, vector<8x128xf32>
    %210 = vector.extract_strided_slice %19 {offsets = [56, 0], sizes = [8, 384], strides = [1, 1]} : vector<64x384xf32> to vector<8x384xf32>
    %211 = arith.truncf %209 : vector<8x128xf32> to vector<8x128xbf16>
    %cst_41 = arith.constant dense<0.000000e+00> : vector<8x384xf32>
    %212 = tpu.matmul %211, %11, %cst_41 {dimension_numbers = #tpu.dot_dimension_numbers<[1], [0], [0], [1], [0, 0, 1, 1], [], []>} : vector<8x128xbf16>, vector<128x384xbf16>, vector<8x384xf32> -> vector<8x384xf32>
    %213 = vector.extract_strided_slice %210 {offsets = [0, 0], sizes = [8, 256], strides = [1, 1]} : vector<8x384xf32> to vector<8x256xf32>
    %214 = vector.extract_strided_slice %212 {offsets = [0, 0], sizes = [8, 256], strides = [1, 1]} : vector<8x384xf32> to vector<8x256xf32>
    %215 = arith.addf %213, %214 : vector<8x256xf32>
    %216 = arith.negf %215 : vector<8x256xf32>
    %217 = math.exp %216 : vector<8x256xf32>
    %cst_42 = arith.constant 1.000000e+00 : f32
    %218 = vector.broadcast %cst_42 : f32 to vector<8x256xf32>
    %219 = arith.addf %218, %217 : vector<8x256xf32>
    %220 = arith.divf %218, %219 : vector<8x256xf32>
    %221 = vector.extract_strided_slice %220 {offsets = [0, 0], sizes = [8, 128], strides = [1, 1]} : vector<8x256xf32> to vector<8x128xf32>
    %222 = vector.extract_strided_slice %220 {offsets = [0, 128], sizes = [8, 128], strides = [1, 1]} : vector<8x256xf32> to vector<8x128xf32>
    %223 = vector.extract_strided_slice %210 {offsets = [0, 256], sizes = [8, 128], strides = [1, 1]} : vector<8x384xf32> to vector<8x128xf32>
    %224 = vector.extract_strided_slice %212 {offsets = [0, 256], sizes = [8, 128], strides = [1, 1]} : vector<8x384xf32> to vector<8x128xf32>
    %225 = arith.addf %224, %5 : vector<8x128xf32>
    %226 = arith.mulf %221, %225 : vector<8x128xf32>
    %227 = arith.addf %223, %226 : vector<8x128xf32>
    %228 = math.tanh %227 : vector<8x128xf32>
    %cst_43 = arith.constant 1.000000e+00 : f32
    %229 = vector.broadcast %cst_43 : f32 to vector<8x128xf32>
    %230 = arith.subf %229, %222 : vector<8x128xf32>
    %231 = arith.mulf %230, %228 : vector<8x128xf32>
    %232 = arith.mulf %222, %209 : vector<8x128xf32>
    %233 = arith.addf %231, %232 : vector<8x128xf32>
    %cst_44 = arith.constant 7.000000e+00 : f32
    %234 = vector.broadcast %cst_44 : f32 to vector<8x128xf32>
    %235 = arith.cmpf ogt, %0, %234 : vector<8x128xf32>
    %236 = arith.select %235, %233, %209 : vector<8x128xi1>, vector<8x128xf32>
    %c0_45 = arith.constant 0 : index
    %c0_46 = arith.constant 0 : index
    %237 = vector.load %arg1[%c0_45, %c0_46] : memref<8x128xf32, #tpu.memory_space<vmem>>, vector<8x128xf32>
    %238 = arith.truncf %237 : vector<8x128xf32> to vector<8x128xbf16>
    %c0_47 = arith.constant 0 : index
    %c0_48 = arith.constant 0 : index
    %c0_49 = arith.constant 0 : index
    %239 = vector.load %arg4[%c0_47, %c0_48, %c0_49] : memref<2x128x32xbf16, #tpu.memory_space<vmem>>, vector<1x128x32xbf16>
    %240 = vector.shape_cast %239 : vector<1x128x32xbf16> to vector<128x32xbf16>
    %cst_50 = arith.constant dense<0.000000e+00> : vector<8x32xf32>
    %241 = tpu.matmul %238, %240, %cst_50 {dimension_numbers = #tpu.dot_dimension_numbers<[1], [0], [0], [1], [0, 0, 1, 1], [], []>} : vector<8x128xbf16>, vector<128x32xbf16>, vector<8x32xf32> -> vector<8x32xf32>
    %242 = arith.truncf %236 : vector<8x128xf32> to vector<8x128xbf16>
    %c1_51 = arith.constant 1 : index
    %c0_52 = arith.constant 0 : index
    %c0_53 = arith.constant 0 : index
    %243 = vector.load %arg4[%c1_51, %c0_52, %c0_53] : memref<2x128x32xbf16, #tpu.memory_space<vmem>>, vector<1x128x32xbf16>
    %244 = vector.shape_cast %243 : vector<1x128x32xbf16> to vector<128x32xbf16>
    %cst_54 = arith.constant dense<0.000000e+00> : vector<8x32xf32>
    %245 = tpu.matmul %242, %244, %cst_54 {dimension_numbers = #tpu.dot_dimension_numbers<[1], [0], [0], [1], [0, 0, 1, 1], [], []>} : vector<8x128xbf16>, vector<128x32xbf16>, vector<8x32xf32> -> vector<8x32xf32>
    %246 = arith.addf %241, %245 : vector<8x32xf32>
    %247 = vector.broadcast %7 : vector<1x32xf32> to vector<8x32xf32>
    %248 = arith.addf %246, %247 : vector<8x32xf32>
    %c0_55 = arith.constant 0 : index
    %c0_56 = arith.constant 0 : index
    %249 = vector.load %arg5[%c0_55, %c0_56] : memref<8x32xf32, #tpu.memory_space<vmem>>, vector<8x32xf32>
    tpu.vector_store %arg5[%c0_55, %c0_56], %248 {strides = array<i32>} : memref<8x32xf32, #tpu.memory_space<vmem>>, vector<8x32xf32>,
    return
  }
}

</mosaic_0001>

<bundles_post_ra>
// kernel: tpu_custom_call.1
= control target key start
LH: loop header
LB: loop body
LE: loop exit
PB: predicated region body
PF: predicated region fallthrough
CT: control target
= control target key end

     0   :  { %10 = vsyncpa [#allocation3], 0  ;;  %s4643_s0 = inlined_call_operand.vmem [shape: f32[64,128], index: 0, kind: input, shape index: {}]   ;;  %s4644_s1 = inlined_call_operand.vmem [shape: f32[8,128], index: 1, kind: input, shape index: {}]   ;;  %s4645_s2 = inlined_call_operand.vmem [shape: f32[12,128], index: 2, kind: input, shape index: {}]   ;;  %s4646_s3 = inlined_call_operand.hbm [shape: bf16[2,128,384], index: 3, kind: input, shape index: {}]   ;;  %s4647_s4 = inlined_call_operand.vmem [shape: bf16[2,128,32], index: 4, kind: input, shape index: {}]   ;;  %s4648_s5 = inlined_call_operand.hbm [shape: f32[8,32], index: 5, kind: output, shape index: {}]  }
   0x1   :  { %11 = vsyncpa [#allocation4], 0  ;;  %s3222_s18 = smov [#allocation2]   ;;  %s3174_s22 = scalar_lea.hbm %s4646_s3, 6144 }
   0x2   :  { %s23_s19 = sshll.u32 %s3222_s18, 4  ;;  %p3175_p0 = scmp.ne.s32.totalorder %s4646_s3, %s3174_s22  ;;  %s24_s19 = int_to_ptr.vmem [resolvable:$true] %s23_s19 }
   0x3   :  { %p3178_p1 = scmp.lt.u32.totalorder %s3174_s22, %s4646_s3 }
   0x5   :  { %p3180_p2 = pnand %p3178_p1, %p3175_p0 }
   0x7   :  { %3183 = shalt.err (!%p3180_p2)
}
   0x8   :  { %s3184_s27 = scalar_lea.vmem %s24_s19, 6144  ;;  %p3189_p4 = scmp.lt.s32.totalorder %s24_s19, %s24_s19 }
   0x9   :  { %p3185_p3 = scmp.ne.s32.totalorder %s24_s19, %s3184_s27  ;;  %p3190_p5 = scmp.lt.s32.totalorder %s3184_s27, %s3184_s27 }
   0xb   :  { %p3191_p6 = por %p3190_p5, %p3189_p4 }
   0xd   :  { %p3192_p7 = pnand %p3191_p6, %p3185_p3 }
   0xf   :  { %3195 = shalt.err (!%p3192_p7)
}
  0x10   :  { %s3223_s28 = smov 192   ;;  %s3224_s29 = smov 12  }
  0x11   :  { %29 = dma.hbm_to_vmem [thread:$0]  %s4646_s3, 6144, %s24_s19, [#allocation3], %s3223_s28, %s3223_s28, %s3224_s29  }
  0x12   :  { %3218 = dma.done.wait [#allocation3], 6144  }
  0x13   :  { %3219 = vsyncadd [#allocation3], 4294961152  ;;  %v4649_v0 = vmov 0   ;;  %v2954_v1 = vld [vmem:[#allocation2 + $0x4] ss:$12 sps:$4 sm:$0xff]   ;;  %v111_v17 = vld [vmem:[%s4643_s0 + $0x8] sm:$0xff] }
  0x14   :  { %1130 = vmatprep.mubr.bf16.mxu0 %v4649_v0  ;;  %v2956_v2 = vld [vmem:[#allocation2] ss:$12 sps:$4 sm:$0xff]   ;;  %1098 = vmatprep.subr.bf16.mxu0 %v2954_v1  ;;  %v2957_v3 = vld [vmem:[#allocation2 + $0x1c] ss:$12 sps:$4 sm:$0xff]   ;;  %v2959_v4 = vld [vmem:[#allocation2 + $0x18] ss:$12 sps:$4 sm:$0xff]  }
  0x15   :  { %1099 = vmatpush1.bf16.msra.mxu0 %v2956_v2  ;;  %v2960_v5 = vld [vmem:[#allocation2 + $0x34] ss:$12 sps:$4 sm:$0xff]   ;;  %v2962_v6 = vld [vmem:[#allocation2 + $0x30] ss:$12 sps:$4 sm:$0xff]   ;;  %v2963_v7 = vld [vmem:[#allocation2 + $0x4c] ss:$12 sps:$4 sm:$0xff]  }
  0x16   :  { %1100 = vmatprep.subr.bf16.mxu0 %v2957_v3  ;;  %v2974_v8 = vld [vmem:[#allocation2 + $0x8] ss:$12 sps:$4 sm:$0xff]   ;;  %v2966_v10 = vld [vmem:[#allocation2 + $0x64] ss:$12 sps:$4 sm:$0xff]   ;;  %v2978_v11 = vld [vmem:[#allocation2 + $0x20] ss:$12 sps:$4 sm:$0xff]  }
  0x17   :  { %v2965_v9 = vld [vmem:[#allocation2 + $0x48] ss:$12 sps:$4 sm:$0xff]   ;;  %2685 = vmatprep.subr.bf16.mxu1 %v2974_v8  ;;  %v2980_v12 = vld [vmem:[#allocation2 + $0x38] ss:$12 sps:$4 sm:$0xff]   ;;  %v2968_v13 = vld [vmem:[#allocation2 + $0x60] ss:$12 sps:$4 sm:$0xff]  }
  0x18   :  { %2686 = vmatpush3.bf16.msra.mxu1 %v2974_v8  ;;  %v3281_v14 = vld [vmem:[%s4645_s2 + $0x8] ss:$0 sm:$0xff]  ;;  %v3286_v15 = vld [vmem:[%s4645_s2 + $0x9] ss:$0 sm:$0xff]  ;;  %v110_v16 = vld [vmem:[%s4643_s0] sm:$0xff]  ;;  %s3234_s16 = smov [#allocation5]  }
  0x19   :  { %1101 = vmatpush1.bf16.msra.mxu0 %v2959_v4  ;;  %2687 = vmatprep.subr.bf16.mxu1 %v2978_v11  ;;  %v2969_v18 = vld [vmem:[#allocation2 + $0x7c] ss:$12 sps:$4 sm:$0xff]   ;;  %v122_v19 = vmul.f32 %v3281_v14, %v110_v16  ;;  %v123_v20 = vmul.f32 %v3281_v14, %v111_v17  ;;  %v2971_v22 = vld [vmem:[#allocation2 + $0x78] ss:$12 sps:$4 sm:$0xff]   ;;  %v2972_v25 = vld [vmem:[#allocation2 + $0x94] ss:$12 sps:$4 sm:$0xff]  }
  0x1a   :  { %1102 = vmatprep.subr.bf16.mxu0 %v2960_v5  ;;  %v2984_v21 = vld [vmem:[#allocation2 + $0x50] ss:$12 sps:$4 sm:$0xff]   ;;  %v2988_v31 = vld [vmem:[#allocation2 + $0x68] ss:$12 sps:$4 sm:$0xff]   ;;  %v2976_v36 = vld [vmem:[#allocation2 + $0xac] ss:$12 sps:$4 sm:$0xff]  }
  0x1b   :  { %v3297_v23 = vadd.f32 %v3286_v15, %v122_v19  ;;  %v3300_v24 = vadd.f32 %v3286_v15, %v123_v20  ;;  %v112_v28 = vld [vmem:[%s4643_s0 + $0x10] sm:$0xff]  ;;  %v3226_v60 = vmov 683565275   ;;  %v3227_v62 = vmov 2475754826   ;;  %s2436_s17 = sshll.u32 %s3234_s16, 4  ;;  %s2437_s17 = int_to_ptr.vmem [resolvable:$true] %s2436_s17 }
  0x1c   :  { %2688 = vmatpush3.bf16.msra.mxu1 %v2978_v11  ;;  %v2975_v32 = vld [vmem:[#allocation2 + $0x90] ss:$12 sps:$4 sm:$0xff]   ;;  %v124_v35 = vmul.f32 %v3281_v14, %v112_v28  ;;  %v2979_v42 = vld [vmem:[#allocation2 + $0xa8] ss:$12 sps:$4 sm:$0xff]   ;;  %v3228_v1 = vmov 2131351028   ;;  %p3201_p9 = scmp.lt.s32.totalorder %s2437_s17, %s2437_s17 }
  0x1d   :  { %1103 = vmatpush1.bf16.msra.mxu0 %v2962_v6  ;;  %2689 = vmatprep.subr.bf16.mxu1 %v2980_v12  ;;  %v142_v26 = vand.u32 2147483647, %v3297_v23  ;;  %v145_v27 = vand.u32 2139095040, %v3297_v23  ;;  %v245_v29 = vand.u32 2147483647, %v3300_v24  ;;  %v248_v30 = vand.u32 2139095040, %v3300_v24 }
  0x1e   :  { %1104 = vmatprep.subr.bf16.mxu0 %v2963_v7  ;;  %v3315_v40 = vadd.f32 %v3286_v15, %v124_v35  ;;  %v2981_v48 = vld [vmem:[#allocation2 + $0xc4] ss:$12 sps:$4 sm:$0xff]   ;;  %v3229_v3 = vmov 2102212464   ;;  %v3230_v5 = vmov 920167782  }
  0x1f   :  { %v146_v33 = vshrl.u32 %v145_v27, 23  ;;  %v149_v34 = vand.u32 8388607, %v142_v26  ;;  %v249_v37 = vshrl.u32 %v248_v30, 23  ;;  %v252_v38 = vand.u32 8388607, %v245_v29 }
  0x20   :  { %2690 = vmatpush3.bf16.msra.mxu1 %v2980_v12  ;;  %v351_v47 = vand.u32 2139095040, %v3315_v40  ;;  %v348_v58 = vand.u32 2147483647, %v3315_v40  ;;  %v2996_v28 = vld [vmem:[#allocation2 + $0x98] ss:$12 sps:$4 sm:$0xff]   ;;  %vm144_vm13 = vcmp.lt.s32.totalorder %v3297_v23, 0 }
  0x21   :  { %1105 = vmatpush1.bf16.msra.mxu0 %v2965_v9  ;;  %2691 = vmatprep.subr.bf16.mxu1 %v2984_v21  ;;  %v2448_v39 = vadd.s32 4294967169, %v146_v33  ;;  %v2452_v41 = vadd.s32 4294967169, %v249_v37  ;;  %v150_v43 = vor.u32 8388608, %v149_v34  ;;  %v253_v45 = vor.u32 8388608, %v252_v38  ;;  %s3196_s18 = scalar_lea.vmem %s2437_s17, 128 }
  0x22   :  { %1106 = vmatprep.subr.bf16.mxu0 %v2966_v10  ;;  %v352_v50 = vshrl.u32 %v351_v47, 23  ;;  %p3197_p8 = scmp.ne.s32.totalorder %s2437_s17, %s3196_s18  ;;  %p3202_p10 = scmp.lt.s32.totalorder %s3196_s18, %s3196_s18 }
  0x23   :  { %v152_v44 = vadd.s32 1, %v2448_v39  ;;  %v255_v46 = vadd.s32 1, %v2452_v41  ;;  %v3318_v53 = vshll.u32 %v150_v43, 8  ;;  %v3324_v57 = vshll.u32 %v253_v45, 8 }
  0x24   :  { %2692 = vmatpush3.bf16.msra.mxu1 %v2984_v21  ;;  %v3332_v7 = vadd.s32 4294967169, %v352_v50  ;;  %v2992_v21 = vld [vmem:[#allocation2 + $0x80] ss:$12 sps:$4 sm:$0xff]   ;;  %p3203_p11 = por %p3202_p10, %p3201_p9 }
  0x25   :  { %1107 = vmatpush1.bf16.msra.mxu0 %v2968_v13  ;;  %2693 = vmatprep.subr.bf16.mxu1 %v2988_v31  ;;  %vm153_vm0 = vcmp.gt.s32.totalorder %v152_v44, 0  ;;  %vm256_vm1 = vcmp.gt.s32.totalorder %v255_v46, 0  ;;  %v3231_v13 = vmov 1326507024  }
  0x26   :  { %1108 = vmatprep.subr.bf16.mxu0 %v2969_v18  ;;  %v154_v49 = vsel %vm153_vm0, %v152_v44, 0  ;;  %v257_v54 = vsel %vm256_vm1, %v255_v46, 0  ;;  %p3204_p12 = pnand %p3203_p11, %p3197_p8 }
  0x27   :  { %v155_v51 = vshrl.u32 %v154_v49, 5  ;;  %v156_v52 = vand.u32 31, %v154_v49  ;;  %v3320_v55 = vshrl.u32 %v257_v54, 5  ;;  %v3322_v56 = vand.u32 31, %v257_v54 }
  0x28   :  { %2694 = vmatpush3.bf16.msra.mxu1 %v2988_v31 }
  0x29   :  { %1109 = vmatpush1.bf16.msra.mxu0 %v2971_v22  ;;  %v157_v59 = vsub.s32 32, %v156_v52  ;;  %v159_v61 = vshll.u32 %v3226_v60, %v156_v52  ;;  %v162_v63 = vshll.u32 %v3227_v62, %v156_v52  ;;  %v165_v2 = vshll.u32 %v3228_v1, %v156_v52  ;;  %2695 = vmatprep.subr.bf16.mxu1 %v2992_v21 }
  0x2a   :  { %1110 = vmatprep.subr.bf16.mxu0 %v2972_v25  ;;  %v168_v4 = vshll.u32 %v3229_v3, %v156_v52  ;;  %v171_v6 = vshll.u32 %v3230_v5, %v156_v52  ;;  %vm174_vm2 = vcmp.lt.s32.totalorder %v155_v51, 1  ;;  %vm175_vm3 = vcmp.lt.s32.totalorder %v155_v51, 2 }
  0x2b   :  { %v158_v8 = vshrl.u32 %v3226_v60, %v157_v59  ;;  %v160_v9 = vshrl.u32 %v3227_v62, %v157_v59  ;;  %v163_v10 = vshrl.u32 %v3228_v1, %v157_v59  ;;  %v166_v11 = vshrl.u32 %v3229_v3, %v157_v59 }
  0x2c   :  { %v169_v12 = vshrl.u32 %v3230_v5, %v157_v59  ;;  %v172_v16 = vshrl.u32 %v3231_v13, %v157_v59  ;;  %vm177_vm4 = vcmp.lt.s32.totalorder %v155_v51, 4  ;;  %v260_v20 = vsub.s32 32, %v3322_v56  ;;  %2696 = vmatpush3.bf16.msra.mxu1 %v2992_v21 }
  0x2d   :  { %1111 = vmatpush1.bf16.msra.mxu0 %v2975_v32  ;;  %v161_v17 = vor.u32 %v160_v9, %v159_v61  ;;  %v164_v18 = vor.u32 %v163_v10, %v162_v63  ;;  %v167_v19 = vor.u32 %v166_v11, %v165_v2  ;;  %vm176_vm5 = vcmp.lt.s32.totalorder %v155_v51, 3  ;;  %2697 = vmatprep.subr.bf16.mxu1 %v2996_v28 }
  0x2e   :  { %1112 = vmatprep.subr.bf16.mxu0 %v2976_v36  ;;  %v170_v22 = vor.u32 %v169_v12, %v168_v4  ;;  %v173_v25 = vor.u32 %v172_v16, %v171_v6  ;;  %v262_v27 = vshll.u32 %v3226_v60, %v3322_v56  ;;  %v265_v37 = vshll.u32 %v3227_v62, %v3322_v56 }
  0x2f   :  { %v178_v30 = vsel %vm174_vm2, %v158_v8, %v161_v17  ;;  %v179_v31 = vsel %vm177_vm4, %v167_v19, 2102212464  ;;  %v182_v32 = vsel %vm174_vm2, %v161_v17, %v164_v18  ;;  %v186_v33 = vsel %vm174_vm2, %v164_v18, %v167_v19 }
  0x30   :  { %v180_v34 = vsel %vm176_vm5, %v164_v18, %v179_v31  ;;  %v183_v35 = vsel %vm177_vm4, %v170_v22, 920167782  ;;  %v187_v36 = vsel %vm177_vm4, %v173_v25, 1326507024  ;;  %v261_v41 = vshrl.u32 %v3226_v60, %v260_v20  ;;  %2698 = vmatpush3.bf16.msra.mxu1 %v2996_v28 }
  0x31   :  { %1113 = vmatpush1.bf16.msra.mxu0 %v2979_v42  ;;  %v184_v38 = vsel %vm176_vm5, %v167_v19, %v183_v35  ;;  %v188_v39 = vsel %vm176_vm5, %v170_v22, %v187_v36  ;;  %v263_v42 = vshrl.u32 %v3227_v62, %v260_v20  ;;  %v181_v43 = vsel %vm175_vm3, %v178_v30, %v180_v34  ;;  %v113_v35 = vld [vmem:[%s4643_s0 + $0x18] sm:$0xff] }
  0x32   :  { %1364 = vmatprep.subr.bf16.mxu0 %v2981_v48  ;;  %v185_v44 = vsel %vm175_vm3, %v182_v32, %v184_v38  ;;  %v189_v45 = vsel %vm175_vm3, %v186_v33, %v188_v39  ;;  %v266_v46 = vshrl.u32 %v3228_v1, %v260_v20  ;;  %v268_v59 = vshll.u32 %v3228_v1, %v3322_v56 }
  0x33   :  { %v3358_v47 = vmul.u32.u64.low %v3318_v53, %v189_v45  ;;  %v3359_v48 = vmul.u32.u64.high %v3318_v53, %v189_v45, %v3358_v47  ;;  %v3362_v49 = vmul.u32.u64.low %v3318_v53, %v185_v44  ;;  %v3363_v50 = vmul.u32.u64.high %v3318_v53, %v185_v44, %v3362_v49 }
  0x34   :  { %v264_v52 = vor.u32 %v263_v42, %v262_v27  ;;  %v267_v54 = vor.u32 %v266_v46, %v265_v37  ;;  %v269_v61 = vshrl.u32 %v3229_v3, %v260_v20  ;;  %v271_v51 = vshll.u32 %v3229_v3, %v3322_v56 }
  0x35   :  { %v272_v63 = vshrl.u32 %v3230_v5, %v260_v20  ;;  %v274_v2 = vshll.u32 %v3230_v5, %v3322_v56  ;;  %v275_v4 = vshrl.u32 %v3231_v13, %v260_v20  ;;  %v197_v6 = vmul.u32 %v3318_v53, %v181_v43 }
  0x36   :  { %v270_v8 = vor.u32 %v269_v61, %v268_v59  ;;  %vm277_vm6 = vcmp.lt.s32.totalorder %v3320_v55, 1  ;;  %vm278_vm7 = vcmp.lt.s32.totalorder %v3320_v55, 2  ;;  %vm199_vm8 = vc.u32 %v3359_v48, %v3362_v49 }
  0x37   :  { %v200_v9 = vadd.s32 1, %v3363_v50  ;;  %v273_v10 = vor.u32 %v272_v63, %v271_v51  ;;  %vm279_vm9 = vcmp.lt.s32.totalorder %v3320_v55, 3  ;;  %v276_v11 = vor.u32 %v275_v4, %v274_v2 }
  0x38   :  { %vm280_vm10 = vcmp.lt.s32.totalorder %v3320_v55, 4  ;;  %v281_v56 = vsel %vm277_vm6, %v261_v41, %v264_v52  ;;  %v285_v12 = vsel %vm277_vm6, %v264_v52, %v267_v54  ;;  %v289_v18 = vsel %vm277_vm6, %v267_v54, %v270_v8 }
  0x39   :  { %v201_v53 = vsel %vm199_vm8, %v200_v9, %v3363_v50  ;;  %v282_v16 = vsel %vm280_vm10, %v270_v8, 2102212464  ;;  %v286_v17 = vsel %vm280_vm10, %v273_v10, 920167782  ;;  %v290_v22 = vsel %vm280_vm10, %v276_v11, 1326507024 }
  0x3a   :  { %v202_v19 = vadd.s32 %v201_v53, %v197_v6  ;;  %v283_v20 = vsel %vm279_vm9, %v267_v54, %v282_v16  ;;  %v287_v21 = vsel %vm279_vm9, %v270_v8, %v286_v17  ;;  %v291_v28 = vsel %vm279_vm9, %v273_v10, %v290_v22 }
  0x3b   :  { %v284_v25 = vsel %vm278_vm7, %v281_v56, %v283_v20  ;;  %v288_v27 = vsel %vm278_vm7, %v285_v12, %v287_v21  ;;  %v358_v30 = vadd.s32 1, %v3332_v7  ;;  %v292_v32 = vsel %vm278_vm7, %v289_v18, %v291_v28 }
  0x3c   :  { %v203_v31 = vadd.s32 536870912, %v202_v19  ;;  %v3392_v33 = vmul.u32.u64.low %v3324_v57, %v288_v27  ;;  %v3393_v34 = vmul.u32.u64.high %v3324_v57, %v288_v27, %v3392_v33  ;;  %v300_v55 = vmul.u32 %v3324_v57, %v284_v25 }
  0x3d   :  { %v3400_v36 = vmul.u32.u64.low %v3324_v57, %v292_v32  ;;  %v3401_v37 = vmul.u32.u64.high %v3324_v57, %v292_v32, %v3400_v36  ;;  %vm359_vm11 = vcmp.gt.s32.totalorder %v358_v30, 0  ;;  %v125_v39 = vmul.f32 %v3281_v14, %v113_v35 }
  0x3e   :  { %v3403_v38 = vshrl.u32 %v203_v31, 30  ;;  %v360_v7 = vsel %vm359_vm11, %v358_v30, 0  ;;  %v355_v41 = vand.u32 8388607, %v348_v58  ;;  %v303_v44 = vadd.s32 1, %v3393_v34 }
  0x3f   :  { %v362_v42 = vand.u32 31, %v360_v7  ;;  %vm302_vm12 = vc.u32 %v3401_v37, %v3392_v33  ;;  %v3417_v57 = vadd.f32 %v3286_v15, %v125_v39  ;;  %v198_v8 = vadd.s32 %v3362_v49, %v3359_v48 }
  0x40   :  { %v205_v43 = vshll.u32 %v3403_v38, 30  ;;  %v304_v47 = vsel %vm302_vm12, %v303_v44, %v3393_v34  ;;  %v356_v52 = vor.u32 8388608, %v355_v41  ;;  %v361_v10 = vshrl.u32 %v360_v7, 5 }
  0x41   :  { %v363_v45 = vsub.s32 32, %v362_v42  ;;  %v305_v50 = vadd.s32 %v304_v47, %v300_v55  ;;  %v365_v59 = vshll.u32 %v3226_v60, %v362_v42  ;;  %v368_v51 = vshll.u32 %v3227_v62, %v362_v42 }
  0x42   :  { %v3413_v46 = vsub.s32 %v202_v19, %v205_v43  ;;  %v371_v4 = vshll.u32 %v3228_v1, %v362_v42  ;;  %v374_v11 = vshll.u32 %v3229_v3, %v362_v42  ;;  %v228_v56 = vsub.s32 4, %v3403_v38 }
  0x43   :  { %v366_v61 = vshrl.u32 %v3227_v62, %v363_v45  ;;  %v306_v63 = vadd.s32 536870912, %v305_v50  ;;  %v369_v2 = vshrl.u32 %v3228_v1, %v363_v45  ;;  %v372_v6 = vshrl.u32 %v3229_v3, %v363_v45 }
  0x44   :  { %v208_v54 = vsub.s32 0, %v3413_v46  ;;  %v375_v53 = vshrl.u32 %v3230_v5, %v363_v45  ;;  %v454_v16 = vand.u32 2139095040, %v3417_v57  ;;  %v364_v18 = vshrl.u32 %v3226_v60, %v363_v45 }
  0x45   :  { %v3432_v12 = vshrl.u32 %v306_v63, 30  ;;  %v377_v19 = vshll.u32 %v3230_v5, %v362_v42  ;;  %v378_v48 = vshrl.u32 %v3231_v13, %v363_v45  ;;  %v367_v20 = vor.u32 %v366_v61, %v365_v59 }
  0x46   :  { %v2449_v9 = vmin.u32 %v208_v54, %v3413_v46  ;;  %v370_v21 = vor.u32 %v369_v2, %v368_v51  ;;  %v373_v22 = vor.u32 %v372_v6, %v371_v4  ;;  %v376_v27 = vor.u32 %v375_v53, %v374_v11 }
  0x47   :  { %v308_v49 = vshll.u32 %v3432_v12, 30  ;;  %vm380_vm14 = vcmp.lt.s32.totalorder %v361_v10, 1  ;;  %vm383_vm15 = vcmp.lt.s32.totalorder %v361_v10, 4  ;;  %vm381_vm0 = vcmp.lt.s32.totalorder %v361_v10, 2 }
  0x48   :  { %v210_v17 = vclz %v2449_v9  ;;  %v385_v30 = vsel %vm383_vm15, %v373_v22, 2102212464  ;;  %v455_v31 = vshrl.u32 %v454_v16, 23  ;;  %v379_v32 = vor.u32 %v378_v48, %v377_v19 }
  0x49   :  { %v3440_v28 = vsub.s32 %v305_v50, %v308_v49  ;;  %vm382_vm2 = vcmp.lt.s32.totalorder %v361_v10, 3  ;;  %v384_v34 = vsel %vm380_vm14, %v364_v18, %v367_v20  ;;  %v388_v55 = vsel %vm380_vm14, %v367_v20, %v370_v21 }
  0x4a   :  { %v2450_v25 = vadd.s32 4294967294, %v210_v17  ;;  %v386_v7 = vsel %vm382_vm2, %v370_v21, %v385_v30  ;;  %v389_v43 = vsel %vm383_vm15, %v376_v27, 920167782  ;;  %vm3451_vm3 = vcmp.le.f32.partialorder %v142_v26, 0.7853982 }
  0x4b   :  { %v311_v36 = vsub.s32 0, %v3440_v28  ;;  %v229_v45 = vsel %vm144_vm13, %v228_v56, %v3403_v38  ;;  %v396_v50 = vshll.u32 %v356_v52, 8  ;;  %v392_v61 = vsel %vm380_vm14, %v370_v21, %v373_v22 }
  0x4c   :  { %vm2451_vm1 = vcmp.lt.s32.totalorder %v2450_v25, 0  ;;  %v387_v63 = vsel %vm381_vm0, %v384_v34, %v386_v7  ;;  %v393_v2 = vsel %vm383_vm15, %v379_v32, 1326507024  ;;  %v2460_v9 = vadd.s32 4294967169, %v455_v31 }
  0x4d   :  { %v213_v35 = vsel %vm2451_vm1, 0, %v2450_v25  ;;  %v2453_v47 = vmin.u32 %v311_v36, %v3440_v28  ;;  %v394_v38 = vsel %vm382_vm2, %v376_v27, %v393_v2  ;;  %v301_v19 = vadd.s32 %v3392_v33, %v3401_v37 }
  0x4e   :  { %v214_v39 = vsub.s32 32, %v213_v35  ;;  %v215_v41 = vshll.u32 %v3413_v46, %v213_v35  ;;  %v218_v42 = vsub.s32 4294967266, %v213_v35  ;;  %v390_v46 = vsel %vm382_vm2, %v373_v22, %v389_v43 }
  0x4f   :  { %v313_v51 = vclz %v2453_v47  ;;  %v391_v26 = vsel %vm381_vm0, %v388_v55, %v390_v46  ;;  %v395_v52 = vsel %vm381_vm0, %v392_v61, %v394_v38  ;;  %v451_v48 = vand.u32 2147483647, %v3417_v57 }
  0x50   :  { %v216_v54 = vshrl.u32 %v198_v8, %v214_v39  ;;  %v219_v59 = vadd.s32 127, %v218_v42  ;;  %v3466_v8 = vmul.u32.u64.low %v396_v50, %v391_v26  ;;  %v3467_v56 = vmul.u32.u64.high %v396_v50, %v391_v26, %v3466_v8 }
  0x51   :  { %v2454_v11 = vadd.s32 4294967294, %v313_v51  ;;  %v3470_v17 = vmul.u32.u64.low %v396_v50, %v395_v52  ;;  %v3471_v18 = vmul.u32.u64.high %v396_v50, %v395_v52, %v3470_v17  ;;  %v461_v49 = vadd.s32 1, %v2460_v9  ;;  %v114_v52 = vld [vmem:[%s4643_s0 + $0x20] sm:$0xff] }
  0x52   :  { %v217_v4 = vor.u32 %v216_v54, %v215_v41  ;;  %v220_v6 = vshll.u32 %v219_v59, 23  ;;  %v231_v10 = vsel %vm3451_vm3, 0, %v229_v45  ;;  %v403_v22 = vmul.u32 %v396_v50, %v387_v63  ;;  %v3000_v41 = vld [vmem:[#allocation2 + $0xb0] ss:$12 sps:$4 sm:$0xff]  }
  0x53   :  { %vm2455_vm4 = vcmp.lt.s32.totalorder %v2454_v11, 0  ;;  %v406_v31 = vadd.s32 1, %v3467_v56  ;;  %v331_v34 = vsub.s32 4, %v3432_v12  ;;  %vm405_vm5 = vc.u32 %v3471_v18, %v3466_v8  ;;  %2699 = vmatprep.subr.bf16.mxu1 %v3000_v41 }
  0x54   :  { %v221_v53 = vor.u32 4788187, %v220_v6  ;;  %v224_v16 = vcvt.s32.f32 %v217_v4  ;;  %v316_v21 = vsel %vm2455_vm4, 0, %v2454_v11  ;;  %vm462_vm6 = vcmp.gt.s32.totalorder %v461_v49, 0  ;;  %2700 = vmatpush3.bf16.msra.mxu1 %v3000_v41 }
  0x55   :  { %v317_v25 = vsub.s32 32, %v316_v21  ;;  %v318_v27 = vshll.u32 %v3440_v28, %v316_v21  ;;  %v321_v30 = vsub.s32 4294967266, %v316_v21  ;;  %v407_v35 = vsel %vm405_vm5, %v406_v31, %v3467_v56 }
  0x56   :  { %v222_v20 = vand.u32 2147483647, %v221_v53  ;;  %v463_v36 = vsel %vm462_vm6, %v461_v49, 0  ;;  %v408_v55 = vadd.s32 %v407_v35, %v403_v22  ;;  %v458_v28 = vand.u32 8388607, %v451_v48 }
  0x57   :  { %v319_v33 = vshrl.u32 %v301_v19, %v317_v25  ;;  %v322_v37 = vadd.s32 127, %v321_v30  ;;  %v465_v39 = vand.u32 31, %v463_v36  ;;  %vm3488_vm7 = vcmp.le.f32.partialorder %v245_v29, 0.7853982 }
  0x58   :  { %v225_v32 = vmul.f32 %v224_v16, %v222_v20  ;;  %vm247_vm8 = vcmp.lt.s32.totalorder %v3300_v24, 0  ;;  %v3495_v50 = vand.u32 3, %v231_v10  ;;  %v409_v54 = vadd.s32 536870912, %v408_v55 }
  0x59   :  { %v320_v43 = vor.u32 %v319_v33, %v318_v27  ;;  %v323_v45 = vshll.u32 %v322_v37, 23  ;;  %v466_v59 = vsub.s32 32, %v465_v39  ;;  %v332_v51 = vsel %vm247_vm8, %v331_v34, %v3432_v12 }
  0x5a   :  { %v226_v7 = vxor.u32 2147483648, %v225_v32  ;;  %v3503_v63 = vshrl.u32 %v409_v54, 30  ;;  %v459_v26 = vor.u32 8388608, %v458_v28  ;;  %v3505_v2 = vshrl.u32 %v463_v36, 5 }
  0x5b   :  { %v324_v29 = vor.u32 4788187, %v323_v45  ;;  %v327_v61 = vcvt.s32.f32 %v320_v43  ;;  %v468_v6 = vshll.u32 %v3226_v60, %v465_v39  ;;  %v471_v44 = vshll.u32 %v3227_v62, %v465_v39 }
  0x5c   :  { %v227_v47 = vsel %vm144_vm13, %v226_v7, %v225_v32  ;;  %v411_v38 = vshll.u32 %v3503_v63, 30  ;;  %v469_v9 = vshrl.u32 %v3227_v62, %v466_v59  ;;  %v472_v11 = vshrl.u32 %v3228_v1, %v466_v59 }
  0x5d   :  { %v230_v46 = vsel %vm3451_vm3, %v3297_v23, %v227_v47  ;;  %v325_v4 = vand.u32 2147483647, %v324_v29  ;;  %v474_v12 = vshll.u32 %v3228_v1, %v465_v39  ;;  %v475_v53 = vshrl.u32 %v3229_v3, %v466_v59 }
  0x5e   :  { %3034 = vcosq.f32 %v230_v46  ;;  %v477_v16 = vshll.u32 %v3229_v3, %v465_v39  ;;  %v478_v17 = vshrl.u32 %v3230_v5, %v466_v59  ;;  %vm240_vm9 = vcmp.eq.s32.totalorder %v3495_v50, 2 }
  0x5f   :  { %3036 = vsinq.f32 %v230_v46  ;;  %v328_v56 = vmul.f32 %v327_v61, %v325_v4  ;;  %v334_v19 = vsel %vm3488_vm7, 0, %v332_v51  ;;  %v3522_v49 = vsub.s32 %v408_v55, %v411_v38 }
  0x60   :  { %v480_v20 = vshll.u32 %v3230_v5, %v465_v39  ;;  %vm237_vm10 = vcmp.eq.s32.totalorder %v3495_v50, 0  ;;  %v481_v21 = vshrl.u32 %v3231_v13, %v466_v59  ;;  %v3527_v22 = vshll.u32 %v459_v26, 8 }
  0x61   :  { %v329_v10 = vxor.u32 2147483648, %v328_v56  ;;  %v126_v25 = vmul.f32 %v3281_v14, %v114_v52  ;;  %v414_v27 = vsub.s32 0, %v3522_v49  ;;  %v467_v30 = vshrl.u32 %v3226_v60, %v466_v59 }
  0x62   :  { %v470_v31 = vor.u32 %v469_v9, %v468_v6  ;;  %v473_v32 = vor.u32 %v472_v11, %v471_v44  ;;  %v476_v33 = vor.u32 %v475_v53, %v474_v12  ;;  %v479_v37 = vor.u32 %v478_v17, %v477_v16 }
  0x63   :  { %v330_v34 = vsel %vm247_vm8, %v329_v10, %v328_v56  ;;  %vm483_vm11 = vcmp.lt.s32.totalorder %v3505_v2, 1  ;;  %vm236_vm12 = vcmp.lt.s32.totalorder %v3495_v50, 2  ;;  %v2457_v36 = vmin.u32 %v414_v27, %v3522_v49 }
  0x64   :  { %v333_v35 = vsel %vm3488_vm7, %v3300_v24, %v330_v34  ;;  %v482_v7 = vor.u32 %v481_v21, %v480_v20  ;;  %vm486_vm13 = vcmp.lt.s32.totalorder %v3505_v2, 4  ;;  %vm484_vm14 = vcmp.lt.s32.totalorder %v3505_v2, 2 }
  0x65   :  { %3038 = vcosq.f32 %v333_v35  ;;  %vm485_vm15 = vcmp.lt.s32.totalorder %v3505_v2, 3  ;;  %v488_v55 = vsel %vm486_vm13, %v476_v33, 2102212464  ;;  %v416_v39 = vclz %v2457_v36  ;;  %v115_v2 = vld [vmem:[%s4643_s0 + $0x28] sm:$0xff] }
  0x66   :  { %3040 = vsinq.f32 %v333_v35  ;;  %v487_v41 = vsel %vm483_vm11, %v467_v30, %v470_v31  ;;  %v489_v42 = vsel %vm485_vm15, %v473_v32, %v488_v55  ;;  %v491_v47 = vsel %vm483_vm11, %v470_v31, %v473_v32 }
  0x67   :  { %v492_v54 = vsel %vm486_vm13, %v479_v37, 920167782  ;;  %v495_v59 = vsel %vm483_vm11, %v473_v32, %v476_v33  ;;  %vm234_vm0 = vweird.f32 %v3297_v23  ;;  %v2458_v29 = vadd.s32 4294967294, %v416_v39 }
  0x68   :  { %v3035_v28 = vpop.eup %3034  ;;  %v493_v61 = vsel %vm485_vm15, %v476_v33, %v492_v54  ;;  %v496_v51 = vsel %vm486_vm13, %v482_v7, 1326507024  ;;  %v338_v26 = vand.u32 3, %v334_v19  ;;  %v404_v4 = vadd.s32 %v3466_v8, %v3471_v18 }
  0x69   :  { %v3037_v43 = vpop.eup %3036  ;;  %v241_v45 = vxor.u32 2147483648, %v3035_v28  ;;  %v497_v6 = vsel %vm485_vm15, %v479_v37, %v496_v51  ;;  %v3565_v44 = vadd.f32 %v3286_v15, %v126_v25  ;;  %vm337_vm1 = vweird.f32 %v3300_v24 }
  0x6a   :  { %v238_v46 = vxor.u32 2147483648, %v3037_v43  ;;  %vm2459_vm2 = vcmp.lt.s32.totalorder %v2458_v29, 0  ;;  %v490_v38 = vsel %vm484_vm14, %v487_v41, %v489_v42  ;;  %v494_v9 = vsel %vm484_vm14, %v491_v47, %v493_v61 }
  0x6b   :  { %v498_v11 = vsel %vm484_vm14, %v495_v59, %v497_v6  ;;  %v242_v8 = vsel %vm240_vm9, %v241_v45, %v3037_v43  ;;  %v419_v18 = vsel %vm2459_vm2, 0, %v2458_v29  ;;  %vm350_vm3 = vcmp.lt.s32.totalorder %v3315_v40, 0  ;;  %v2983_v59 = vld [vmem:[#allocation2 + $0xc0] ss:$12 sps:$4 sm:$0xff]   ;;  %v2985_v6 = vld [vmem:[#allocation2 + $0xdc] ss:$12 sps:$4 sm:$0xff]  }
  0x6c   :  { %v3577_v12 = vmul.u32.u64.low %v3527_v22, %v498_v11  ;;  %v3578_v52 = vmul.u32.u64.high %v3527_v22, %v498_v11, %v3577_v12  ;;  %v239_v56 = vsel %vm237_vm10, %v3035_v28, %v238_v46  ;;  %v420_v53 = vsub.s32 32, %v419_v18 }
  0x6d   :  { %v421_v16 = vshll.u32 %v3522_v49, %v419_v18  ;;  %v424_v17 = vsub.s32 4294967266, %v419_v18  ;;  %vm339_vm4 = vcmp.lt.s32.totalorder %v338_v26, 2  ;;  %vm340_vm5 = vcmp.eq.s32.totalorder %v338_v26, 0 }
  0x6e   :  { %v3588_v19 = vmul.u32.u64.low %v3527_v22, %v494_v9  ;;  %v3589_v20 = vmul.u32.u64.high %v3527_v22, %v494_v9, %v3588_v19  ;;  %vm343_vm6 = vcmp.eq.s32.totalorder %v338_v26, 2  ;;  %v422_v10 = vshrl.u32 %v404_v4, %v420_v53 }
  0x6f   :  { %v425_v21 = vadd.s32 127, %v424_v17  ;;  %v557_v25 = vand.u32 2139095040, %v3565_v44  ;;  %v3039_v27 = vpop.eup %3038  ;;  %v243_v49 = vsel %vm236_vm12, %v239_v56, %v242_v8  ;;  %v506_v30 = vmul.u32 %v3527_v22, %v490_v38  ;;  %v116_v8 = vld [vmem:[%s4643_s0 + $0x30] sm:$0xff]  ;;  %v2987_v56 = vld [vmem:[#allocation2 + $0xd8] ss:$12 sps:$4 sm:$0xff]  }
  0x70   :  { %vm508_vm7 = vc.u32 %v3578_v52, %v3588_v19  ;;  %v127_v31 = vmul.f32 %v3281_v14, %v115_v2  ;;  %v3041_v32 = vpop.eup %3040  ;;  %v344_v34 = vxor.u32 2147483648, %v3039_v27  ;;  %v423_v33 = vor.u32 %v422_v10, %v421_v16  ;;  %v2989_v16 = vld [vmem:[#allocation2 + $0xf4] ss:$12 sps:$4 sm:$0xff]  }
  0x71   :  { %v426_v37 = vshll.u32 %v425_v21, 23  ;;  %v558_v35 = vshrl.u32 %v557_v25, 23  ;;  %v341_v36 = vxor.u32 2147483648, %v3041_v32  ;;  %v434_v7 = vsub.s32 4, %v3503_v63 }
  0x72   :  { %v509_v55 = vadd.s32 1, %v3589_v20  ;;  %v554_v50 = vand.u32 2147483647, %v3565_v44  ;;  %v345_v28 = vsel %vm343_vm6, %v344_v34, %v3041_v32  ;;  %v430_v39 = vcvt.s32.f32 %v423_v33 }
  0x73   :  { %v427_v22 = vor.u32 4788187, %v426_v37  ;;  %v2464_v41 = vadd.s32 4294967169, %v558_v35  ;;  %v244_v42 = vsel %vm234_vm0, nan, %v243_v49  ;;  %v342_v43 = vsel %vm340_vm5, %v3039_v27, %v341_v36  ;;  %v3660_v37 = vld [vmem:[#allocation2 + $0xf0] ss:$12 sps:$4 sm:$0xff]  }
  0x74   :  { %v510_v45 = vsel %vm508_vm7, %v509_v55, %v3589_v20  ;;  %v3611_v47 = vadd.f32 %v3286_v15, %v127_v31  ;;  %v346_v54 = vsel %vm339_vm4, %v342_v43, %v345_v28  ;;  %vm3618_vm8 = vcmp.le.f32.partialorder %v348_v58, 0.7853982 }
  0x75   :  { %v428_v46 = vand.u32 2147483647, %v427_v22  ;;  %v511_v29 = vadd.s32 %v510_v45, %v506_v30  ;;  %v564_v61 = vadd.s32 1, %v2464_v41  ;;  %v347_v23 = vsel %vm337_vm1, nan, %v346_v54 }
  0x76   :  { %v435_v15 = vsel %vm350_vm3, %v434_v7, %v3503_v63  ;;  %v561_v26 = vand.u32 8388607, %v554_v50  ;;  %v966_v4 = vpack.c.bf16 %v347_v23, %v244_v42  ;;  %v657_v11 = vand.u32 2147483647, %v3611_v47  ;;  %v3667_v7 = vld [vmem:[#allocation2 + $0x10c] ss:$12 sps:$4 sm:$0xff]  }
  0x77   :  { %v431_v38 = vmul.f32 %v430_v39, %v428_v46  ;;  %v512_v9 = vadd.s32 536870912, %v511_v29  ;;  %vm565_vm9 = vcmp.gt.s32.totalorder %v564_v61, 0  ;;  %v660_v58 = vand.u32 2139095040, %v3611_v47 }
  0x78   :  { %v566_v24 = vsel %vm565_vm9, %v564_v61, 0  ;;  %1131 = vmatmul.mubr.bf16.vlgmr.msra.gmra.mrb[0].mxu0 %v966_v4  ;;  %v437_v63 = vsel %vm3618_vm8, 0, %v435_v15  ;;  %2701 = vmatprep.mubr.bf16.mxu1 %v966_v4  ;;  %v562_v2 = vor.u32 8388608, %v561_v26  ;;  %v3232_v10 = vmov 0.0   ;;  %v3686_v4 = vld [vmem:[#allocation2 + $0x124] ss:$12 sps:$4 sm:$0xff]  }
  0x79   :  { %v3634_v18 = vshrl.u32 %v512_v9, 30  ;;  %v568_v12 = vand.u32 31, %v566_v24  ;;  %1365 = vmatpush1.bf16.msra.mxu0 %v2983_v59  ;;  %1140 = vmatprep.mubr.bf16.mxu0 %v4649_v0  ;;  %v432_v53 = vxor.u32 2147483648, %v431_v38  ;;  %v3640_v21 = vmul.f32 %v3281_v14, %v116_v8 }
  0x7a   :  { %1366 = vmatprep.subr.bf16.mxu0 %v2985_v6  ;;  %2709 = vmatprep.subr.bf16.mxu1 %v3232_v10  ;;  %v3642_v25 = vand.u32 3, %v437_v63  ;;  %v3646_v27 = vadd.s32 %v3588_v19, %v3578_v52  ;;  %v661_v49 = vshrl.u32 %v660_v58, 23  ;;  %v3650_v30 = vand.u32 8388607, %v657_v11 }
  0x7b   :  { %v514_v17 = vshll.u32 %v3634_v18, 30  ;;  %v569_v20 = vsub.s32 32, %v568_v12  ;;  %v3654_v32 = vshrl.u32 %v566_v24, 5  ;;  %v571_v34 = vshll.u32 %v3226_v60, %v568_v12 }
  0x7c   :  { %v574_v14 = vshll.u32 %v3227_v62, %v568_v12  ;;  %v433_v33 = vsel %vm350_vm3, %v432_v53, %v431_v38  ;;  %v577_v35 = vshll.u32 %v3228_v1, %v568_v12  ;;  %vm453_vm10 = vcmp.lt.s32.totalorder %v3417_v57, 0 }
  0x7d   :  { %v3652_v31 = vsub.s32 %v511_v29, %v514_v17  ;;  %1367 = vmatpush1.bf16.msra.mxu0 %v2987_v56  ;;  %v572_v52 = vshrl.u32 %v3227_v62, %v569_v20  ;;  %v575_v19 = vshrl.u32 %v3228_v1, %v569_v20  ;;  %v578_v55 = vshrl.u32 %v3229_v3, %v569_v20  ;;  %v3681_v29 = vld [vmem:[#allocation2 + $0x108] ss:$12 sps:$4 sm:$0xff]  }
  0x7e   :  { %1368 = vmatprep.subr.bf16.mxu0 %v2989_v16  ;;  %v580_v28 = vshll.u32 %v3229_v3, %v568_v12  ;;  %v3671_v22 = vshll.u32 %v562_v2, 8  ;;  %v581_v39 = vshrl.u32 %v3230_v5, %v569_v20  ;;  %v583_v41 = vshll.u32 %v3230_v5, %v568_v12  ;;  %v3706_v16 = vld [vmem:[#allocation2 + $0x120] ss:$12 sps:$4 sm:$0xff]  }
  0x7f   :  { %v517_v36 = vsub.s32 0, %v3652_v31  ;;  %v2468_v42 = vadd.s32 4294967169, %v661_v49  ;;  %v665_v43 = vor.u32 8388608, %v3650_v30  ;;  %v436_v45 = vsel %vm3618_vm8, %v3315_v40, %v433_v33  ;;  %v3715_v49 = vld [vmem:[#allocation2 + $0x13c] ss:$12 sps:$4 sm:$0xff]  }
  0x80   :  { %v573_v59 = vor.u32 %v572_v52, %v571_v34  ;;  %v576_v46 = vor.u32 %v575_v19, %v574_v14  ;;  %v579_v61 = vor.u32 %v578_v55, %v577_v35  ;;  %v582_v23 = vor.u32 %v581_v39, %v580_v28  ;;  %v3734_v39 = vld [vmem:[#allocation2 + $0x138] ss:$12 sps:$4 sm:$0xff]  }
  0x81   :  { %v2461_v54 = vmin.u32 %v517_v36, %v3652_v31  ;;  %1369 = vmatpush1.bf16.msra.mxu0 %v3660_v37  ;;  %v584_v15 = vshrl.u32 %v3231_v13, %v569_v20  ;;  %vm586_vm11 = vcmp.lt.s32.totalorder %v3654_v32, 1  ;;  %v570_v51 = vshrl.u32 %v3226_v60, %v569_v20 }
  0x82   :  { %1370 = vmatprep.subr.bf16.mxu0 %v3667_v7  ;;  %vm588_vm12 = vcmp.lt.s32.totalorder %v3654_v32, 3  ;;  %vm589_vm13 = vcmp.lt.s32.totalorder %v3654_v32, 4  ;;  %3042 = vcosq.f32 %v436_v45  ;;  %vm3693_vm14 = vcmp.le.f32.partialorder %v451_v48, 0.7853982 }
  0x83   :  { %v519_v26 = vclz %v2461_v54  ;;  %v537_v38 = vsub.s32 4, %v3634_v18  ;;  %v585_v9 = vor.u32 %v584_v15, %v583_v41  ;;  %v591_v24 = vsel %vm589_vm13, %v579_v61, 2102212464 }
  0x84   :  { %vm587_vm15 = vcmp.lt.s32.totalorder %v3654_v32, 2  ;;  %v595_v8 = vsel %vm589_vm13, %v582_v23, 920167782  ;;  %v598_v63 = vsel %vm586_vm11, %v576_v46, %v579_v61  ;;  %v594_v12 = vsel %vm586_vm11, %v573_v59, %v576_v46  ;;  %v3742_v32 = vld [vmem:[#allocation2 + $0x154] ss:$12 sps:$4 sm:$0xff]  }
  0x85   :  { %v2462_v58 = vadd.s32 4294967294, %v519_v26  ;;  %1371 = vmatpush1.bf16.msra.mxu0 %v3681_v29  ;;  %v596_v48 = vsel %vm588_vm12, %v579_v61, %v595_v8  ;;  %v599_v56 = vsel %vm589_vm13, %v585_v9, 1326507024  ;;  %v667_v53 = vadd.s32 1, %v2468_v42  ;;  %v3765_v8 = vld [vmem:[#allocation2 + $0x16c] ss:$12 sps:$4 sm:$0xff]  }
  0x86   :  { %1372 = vmatprep.subr.bf16.mxu0 %v3686_v4  ;;  %v590_v17 = vsel %vm586_vm11, %v570_v51, %v573_v59  ;;  %v592_v2 = vsel %vm588_vm12, %v576_v46, %v591_v24  ;;  %v600_v20 = vsel %vm588_vm12, %v582_v23, %v599_v56  ;;  %v3720_v34 = vsel %vm453_vm10, %v537_v38, %v3634_v18  ;;  %v3760_v38 = vld [vmem:[#allocation2 + $0x150] ss:$12 sps:$4 sm:$0xff]  }
  0x87   :  { %vm2463_vm0 = vcmp.lt.s32.totalorder %v2462_v58, 0  ;;  %v601_v14 = vsel %vm587_vm15, %v598_v63, %v600_v20  ;;  %vm668_vm1 = vcmp.gt.s32.totalorder %v667_v53, 0  ;;  %v597_v35 = vsel %vm587_vm15, %v594_v12, %v596_v48 }
  0x88   :  { %v522_v30 = vsel %vm2463_vm0, 0, %v2462_v58  ;;  %v593_v36 = vsel %vm587_vm15, %v590_v17, %v592_v2  ;;  %v3730_v55 = vmul.u32.u64.low %v3671_v22, %v601_v14  ;;  %v3731_v28 = vmul.u32.u64.high %v3671_v22, %v601_v14, %v3730_v55 }
  0x89   :  { %v523_v33 = vsub.s32 32, %v522_v30  ;;  %v524_v52 = vshll.u32 %v3652_v31, %v522_v30  ;;  %v527_v19 = vsub.s32 4294967266, %v522_v30  ;;  %v669_v18 = vsel %vm668_vm1, %v667_v53, 0  ;;  %1373 = vmatpush1.bf16.msra.mxu0 %v3706_v16 }
  0x8a   :  { %v3737_v31 = vshrl.u32 %v669_v18, 5  ;;  %v3739_v54 = vshll.u32 %v665_v43, 8  ;;  %1374 = vmatprep.subr.bf16.mxu0 %v3715_v49  ;;  %3044 = vsinq.f32 %v436_v45  ;;  %v671_v61 = vand.u32 31, %v669_v18 }
  0x8b   :  { %v525_v41 = vshrl.u32 %v3646_v27, %v523_v33  ;;  %v528_v42 = vadd.s32 127, %v527_v19  ;;  %v3745_v59 = vmul.u32.u64.low %v3671_v22, %v597_v35  ;;  %v3746_v46 = vmul.u32.u64.high %v3671_v22, %v597_v35, %v3745_v59  ;;  %v3782_v19 = vld [vmem:[#allocation2 + $0x168] ss:$12 sps:$4 sm:$0xff]  }
  0x8c   :  { %v540_v27 = vsel %vm3693_vm14, 0, %v3720_v34  ;;  %v609_v43 = vmul.u32 %v3671_v22, %v593_v36  ;;  %v3753_v26 = vpop.eup %3042  ;;  %v672_v45 = vsub.s32 32, %v671_v61  ;;  %v674_v51 = vshll.u32 %v3226_v60, %v671_v61 }
  0x8d   :  { %v526_v23 = vor.u32 %v525_v41, %v524_v52  ;;  %v529_v15 = vshll.u32 %v528_v42, 23  ;;  %vm611_vm2 = vc.u32 %v3731_v28, %v3745_v59  ;;  %vm689_vm3 = vcmp.lt.s32.totalorder %v3737_v31, 1  ;;  %1375 = vmatpush1.bf16.msra.mxu0 %v3734_v39 }
  0x8e   :  { %v677_v58 = vshll.u32 %v3227_v62, %v671_v61  ;;  %v680_v22 = vshll.u32 %v3228_v1, %v671_v61  ;;  %1376 = vmatprep.subr.bf16.mxu0 %v3742_v32  ;;  %v612_v63 = vadd.s32 1, %v3746_v46  ;;  %v673_v12 = vshrl.u32 %v3226_v60, %v672_v45 }
  0x8f   :  { %v530_v9 = vor.u32 4788187, %v529_v15  ;;  %v533_v24 = vcvt.s32.f32 %v526_v23  ;;  %v675_v48 = vshrl.u32 %v3227_v62, %v672_v45  ;;  %v678_v56 = vshrl.u32 %v3228_v1, %v672_v45 }
  0x90   :  { %v681_v17 = vshrl.u32 %v3229_v3, %v672_v45  ;;  %v683_v2 = vshll.u32 %v3229_v3, %v671_v61  ;;  %v684_v20 = vshrl.u32 %v3230_v5, %v672_v45  ;;  %vm443_vm4 = vcmp.eq.s32.totalorder %v3642_v25, 0 }
  0x91   :  { %v531_v53 = vand.u32 2147483647, %v530_v9  ;;  %vm446_vm5 = vcmp.eq.s32.totalorder %v3642_v25, 2  ;;  %v613_v30 = vsel %vm611_vm2, %v612_v63, %v3746_v46  ;;  %v676_v14 = vor.u32 %v675_v48, %v674_v51  ;;  %1377 = vmatpush1.bf16.msra.mxu0 %v3760_v38  ;;  %v3805_v48 = vld [vmem:[#allocation2 + $0xc4] ss:$12 sps:$4 sm:$0xff]  }
  0x92   :  { %v679_v33 = vor.u32 %v678_v56, %v677_v58  ;;  %v686_v52 = vshll.u32 %v3230_v5, %v671_v61  ;;  %v614_v36 = vadd.s32 %v613_v30, %v609_v43  ;;  %v682_v55 = vor.u32 %v681_v17, %v680_v22  ;;  %1378 = vmatprep.subr.bf16.mxu0 %v3765_v8 }
  0x93   :  { %v534_v35 = vmul.f32 %v533_v24, %v531_v53  ;;  %v685_v18 = vor.u32 %v684_v20, %v683_v2  ;;  %v447_v41 = vxor.u32 2147483648, %v3753_v26  ;;  %v687_v42 = vshrl.u32 %v3231_v13, %v672_v45 }
  0x94   :  { %vm691_vm6 = vcmp.lt.s32.totalorder %v3737_v31, 3  ;;  %vm692_vm7 = vcmp.lt.s32.totalorder %v3737_v31, 4  ;;  %v615_v61 = vadd.s32 536870912, %v614_v36  ;;  %vm690_vm8 = vcmp.lt.s32.totalorder %v3737_v31, 2  ;;  %v3045_v15 = vpop.eup %3044 }
  0x95   :  { %v535_v46 = vxor.u32 2147483648, %v534_v35  ;;  %v694_v23 = vsel %vm692_vm7, %v682_v55, 2102212464  ;;  %v688_v43 = vor.u32 %v687_v42, %v686_v52  ;;  %v693_v51 = vsel %vm689_vm3, %v673_v12, %v676_v14  ;;  %1379 = vmatpush1.bf16.msra.mxu0 %v3782_v19 }
  0x96   :  { %v697_v9 = vsel %vm689_vm3, %v676_v14, %v679_v33  ;;  %v698_v45 = vsel %vm692_vm7, %v685_v18, 920167782  ;;  %v616_v58 = vshrl.u32 %v615_v61, 30  ;;  %v695_v22 = vsel %vm691_vm6, %v679_v33, %v694_v23  ;;  %1470 = vmatprep.subr.bf16.mxu0 %v3805_v48 }
  0x97   :  { %v536_v24 = vsel %vm453_vm10, %v535_v46, %v534_v35  ;;  %v699_v63 = vsel %vm691_vm6, %v682_v55, %v698_v45  ;;  %v701_v53 = vsel %vm689_vm3, %v679_v33, %v682_v55  ;;  %v702_v17 = vsel %vm692_vm7, %v688_v43, 1326507024  ;;  %v3148_v45 = vld [vmem:[%s4645_s2 + $0x8] ss:$0 sm:$0xff] }
  0x98   :  { %v539_v12 = vsel %vm3693_vm14, %v3417_v57, %v536_v24  ;;  %v700_v56 = vsel %vm690_vm8, %v697_v9, %v699_v63  ;;  %v444_v2 = vxor.u32 2147483648, %v3045_v15  ;;  %v617_v20 = vshll.u32 %v616_v58, 30  ;;  %v117_v9 = vld [vmem:[%s4643_s0 + $0x38] sm:$0xff] }
  0x99   :  { %3046 = vcosq.f32 %v539_v12  ;;  %v703_v30 = vsel %vm691_vm6, %v685_v18, %v702_v17  ;;  %v3822_v52 = vmul.u32.u64.low %v3739_v54, %v700_v56  ;;  %v3823_v35 = vmul.u32.u64.high %v3739_v54, %v700_v56, %v3822_v52  ;;  %v3147_v18 = vld [vmem:[%s4645_s2 + $0x9] ss:$0 sm:$0xff] }
  0x9a   :  { %3048 = vsinq.f32 %v539_v12  ;;  %v704_v14 = vsel %vm690_vm8, %v701_v53, %v703_v30  ;;  %v3826_v42 = vsub.s32 %v614_v36, %v617_v20  ;;  %v696_v33 = vsel %vm690_vm8, %v693_v51, %v695_v22 }
  0x9b   :  { %v3831_v55 = vmul.u32.u64.low %v3739_v54, %v704_v14  ;;  %v3832_v46 = vmul.u32.u64.high %v3739_v54, %v704_v14, %v3831_v55  ;;  %v3838_v61 = vadd.f32 %v3147_v18, %v3640_v21  ;;  %vm442_vm9 = vcmp.lt.s32.totalorder %v3642_v25, 2 }
  0x9c   :  { %v445_v36 = vsel %vm443_vm4, %v3753_v26, %v444_v2  ;;  %v448_v31 = vsel %vm446_vm5, %v447_v41, %v3045_v15  ;;  %v620_v23 = vsub.s32 0, %v3826_v42  ;;  %v544_v43 = vand.u32 3, %v540_v27 }
  0x9d   :  { %v712_v51 = vmul.u32 %v3739_v54, %v696_v33  ;;  %v715_v21 = vadd.s32 1, %v3823_v35  ;;  %v763_v26 = vand.u32 2139095040, %v3838_v61  ;;  %vm440_vm10 = vweird.f32 %v3315_v40 }
  0x9e   :  { %vm543_vm11 = vweird.f32 %v3417_v57  ;;  %vm556_vm12 = vcmp.lt.s32.totalorder %v3565_v44, 0  ;;  %v2465_v25 = vmin.u32 %v620_v23, %v3826_v42  ;;  %v449_v6 = vsel %vm442_vm9, %v445_v36, %v448_v31 }
  0x9f   :  { %vm714_vm13 = vc.u32 %v3832_v46, %v3822_v52  ;;  %v760_v34 = vand.u32 2147483647, %v3838_v61  ;;  %v764_v54 = vshrl.u32 %v763_v26, 23  ;;  %v640_v41 = vsub.s32 4, %v616_v58 }
  0xa0   :  { %v622_v27 = vclz %v2465_v25  ;;  %v716_v15 = vsel %vm714_vm13, %v715_v21, %v3823_v35  ;;  %v129_v24 = vmul.f32 %v3148_v45, %v117_v9  ;;  %vm545_vm14 = vcmp.lt.s32.totalorder %v544_v43, 2 }
  0xa1   :  { %vm546_vm15 = vcmp.eq.s32.totalorder %v544_v43, 0  ;;  %v717_v22 = vadd.s32 %v716_v15, %v712_v51  ;;  %v2472_v63 = vadd.s32 4294967169, %v764_v54  ;;  %v450_v56 = vsel %vm440_vm10, nan, %v449_v6 }
  0xa2   :  { %vm549_vm0 = vcmp.eq.s32.totalorder %v544_v43, 2  ;;  %v610_v53 = vadd.s32 %v3745_v59, %v3731_v28  ;;  %v2466_v17 = vadd.s32 4294967294, %v622_v27  ;;  %v767_v14 = vand.u32 8388607, %v760_v34 }
  0xa3   :  { %v3047_v12 = vpop.eup %3046  ;;  %v718_v30 = vadd.s32 536870912, %v717_v22  ;;  %v770_v35 = vadd.s32 1, %v2472_v63  ;;  %v3876_v55 = vsel %vm556_vm12, %v640_v41, %v616_v58  ;;  %v3878_v40 = vadd.f32 %v3147_v18, %v129_v24  ;;  %v3894_v41 = vld [vmem:[#allocation2 + $0xc8] ss:$12 sps:$4 sm:$0xff]  }
  0xa4   :  { %v3049_v2 = vpop.eup %3048  ;;  %v550_v20 = vxor.u32 2147483648, %v3047_v12  ;;  %vm2467_vm1 = vcmp.lt.s32.totalorder %v2466_v17, 0  ;;  %v768_v25 = vor.u32 8388608, %v767_v14  ;;  %vm3890_vm3 = vcmp.le.f32.partialorder %v554_v50, 0.7853982 }
  0xa5   :  { %v547_v33 = vxor.u32 2147483648, %v3049_v2  ;;  %v625_v31 = vsel %vm2467_vm1, 0, %v2466_v17  ;;  %v3880_v23 = vshrl.u32 %v718_v30, 30  ;;  %vm771_vm2 = vcmp.gt.s32.totalorder %v770_v35, 0 }
  0xa6   :  { %v551_v36 = vsel %vm549_vm0, %v550_v20, %v3049_v2  ;;  %v626_v59 = vsub.s32 32, %v625_v31  ;;  %v627_v51 = vshll.u32 %v3826_v42, %v625_v31  ;;  %v630_v21 = vsub.s32 4294967266, %v625_v31 }
  0xa7   :  { %v548_v28 = vsel %vm546_vm15, %v3047_v12, %v547_v33  ;;  %v720_v26 = vshll.u32 %v3880_v23, 30  ;;  %v772_v58 = vsel %vm771_vm2, %v770_v35, 0  ;;  %v866_v45 = vand.u32 2139095040, %v3878_v40 }
  0xa8   :  { %v552_v9 = vsel %vm545_vm14, %v548_v28, %v551_v36  ;;  %v628_v54 = vshrl.u32 %v610_v53, %v626_v59  ;;  %v631_v27 = vadd.s32 127, %v630_v21  ;;  %v774_v15 = vand.u32 31, %v772_v58 }
  0xa9   :  { %v553_v18 = vsel %vm543_vm11, nan, %v552_v9  ;;  %v3896_v43 = vsub.s32 %v717_v22, %v720_v26  ;;  %v643_v57 = vsel %vm3890_vm3, 0, %v3876_v55  ;;  %v713_v50 = vadd.s32 %v3822_v52, %v3832_v46  ;;  %v3912_v52 = vld [vmem:[#allocation2 + $0xe0] ss:$12 sps:$4 sm:$0xff]  }
  0xaa   :  { %v967_v42 = vpack.c.bf16 %v553_v18, %v450_v56  ;;  %v629_v24 = vor.u32 %v628_v54, %v627_v51  ;;  %v632_v63 = vshll.u32 %v631_v27, 23  ;;  %v775_v53 = vsub.s32 32, %v774_v15  ;;  %v3927_v27 = vld [vmem:[#allocation2 + $0xf8] ss:$12 sps:$4 sm:$0xff]  }
  0xab   :  { %v723_v12 = vsub.s32 0, %v3896_v43  ;;  %v3905_v17 = vshll.u32 %v768_v25, 8  ;;  %v863_v22 = vand.u32 2147483647, %v3878_v40  ;;  %v777_v20 = vshll.u32 %v3226_v60, %v774_v15 }
  0xac   :  { %1141 = vmatmul.mubr.bf16.gmra.mrb[4].mxu0 %v967_v42  ;;  %2702 = vmatmul.mubr.bf16.vlgmr.msra.gmra.mrb[0].mxu1 %v967_v42  ;;  %v633_v56 = vor.u32 4788187, %v632_v63  ;;  %v636_v2 = vcvt.s32.f32 %v629_v24  ;;  %v780_v30 = vshll.u32 %v3227_v62, %v774_v15  ;;  %v3915_v14 = vshrl.u32 %v772_v58, 5 }
  0xad   :  { %1150 = vmatprep.mubr.bf16.mxu0 %v4649_v0  ;;  %2710 = vmatpush3.bf16.msra.mxu1 %v3894_v41  ;;  %v2469_v46 = vmin.u32 %v723_v12, %v3896_v43  ;;  %v783_v35 = vshll.u32 %v3228_v1, %v774_v15  ;;  %v867_v33 = vshrl.u32 %v866_v45, 23  ;;  %v743_v31 = vsub.s32 4, %v3880_v23 }
  0xae   :  { %2711 = vmatprep.subr.bf16.mxu1 %v3232_v10  ;;  %v634_v36 = vand.u32 2147483647, %v633_v56  ;;  %v778_v28 = vshrl.u32 %v3227_v62, %v775_v53  ;;  %v781_v59 = vshrl.u32 %v3228_v1, %v775_v53  ;;  %v784_v21 = vshrl.u32 %v3229_v3, %v775_v53 }
  0xaf   :  { %v725_v51 = vclz %v2469_v46  ;;  %v786_v9 = vshll.u32 %v3229_v3, %v774_v15  ;;  %v787_v26 = vshrl.u32 %v3230_v5, %v775_v53  ;;  %v789_v54 = vshll.u32 %v3230_v5, %v774_v15  ;;  %v3944_v46 = vld [vmem:[#allocation2 + $0x110] ss:$12 sps:$4 sm:$0xff]  }
  0xb0   :  { %v637_v25 = vmul.f32 %v636_v2, %v634_v36  ;;  %v779_v58 = vor.u32 %v778_v28, %v777_v20  ;;  %v782_v18 = vor.u32 %v781_v59, %v780_v30  ;;  %v785_v45 = vor.u32 %v784_v21, %v783_v35 }
  0xb1   :  { %2712 = vmatpush3.bf16.msra.mxu1 %v3912_v52  ;;  %v2470_v42 = vadd.s32 4294967294, %v725_v51  ;;  %v790_v24 = vshrl.u32 %v3231_v13, %v775_v53  ;;  %vm792_vm4 = vcmp.lt.s32.totalorder %v3915_v14, 1  ;;  %v776_v12 = vshrl.u32 %v3226_v60, %v775_v53 }
  0xb2   :  { %2713 = vmatprep.subr.bf16.mxu1 %v3232_v10  ;;  %v638_v63 = vxor.u32 2147483648, %v637_v25  ;;  %v788_v56 = vor.u32 %v787_v26, %v786_v9  ;;  %vm795_vm5 = vcmp.lt.s32.totalorder %v3915_v14, 4  ;;  %vm659_vm6 = vcmp.lt.s32.totalorder %v3611_v47, 0 }
  0xb3   :  { %vm2471_vm7 = vcmp.lt.s32.totalorder %v2470_v42, 0  ;;  %vm793_vm8 = vcmp.lt.s32.totalorder %v3915_v14, 2  ;;  %vm794_vm9 = vcmp.lt.s32.totalorder %v3915_v14, 3  ;;  %v797_v15 = vsel %vm795_vm5, %v785_v45, 2102212464 }
  0xb4   :  { %v639_v2 = vsel %vm556_vm12, %v638_v63, %v637_v25  ;;  %v728_v20 = vsel %vm2471_vm7, 0, %v2470_v42  ;;  %v791_v30 = vor.u32 %v790_v24, %v789_v54  ;;  %v800_v53 = vsel %vm792_vm4, %v779_v58, %v782_v18  ;;  %v3966_v63 = vld [vmem:[#allocation2 + $0x128] ss:$12 sps:$4 sm:$0xff]   ;;  %v3990_v14 = vld [vmem:[#allocation2 + $0x140] ss:$12 sps:$4 sm:$0xff]  }
  0xb5   :  { %2714 = vmatpush3.bf16.msra.mxu1 %v3927_v27  ;;  %v642_v35 = vsel %vm3890_vm3, %v3565_v44, %v639_v2  ;;  %v729_v36 = vsub.s32 32, %v728_v20  ;;  %v730_v28 = vshll.u32 %v3896_v43, %v728_v20  ;;  %v733_v59 = vsub.s32 4294967266, %v728_v20 }
  0xb6   :  { %2715 = vmatprep.subr.bf16.mxu1 %v3232_v10  ;;  %3050 = vcosq.f32 %v642_v35  ;;  %v796_v51 = vsel %vm792_vm4, %v776_v12, %v779_v58  ;;  %v798_v21 = vsel %vm794_vm9, %v782_v18, %v797_v15  ;;  %v801_v9 = vsel %vm795_vm5, %v788_v56, 920167782 }
  0xb7   :  { %v731_v26 = vshrl.u32 %v713_v50, %v729_v36  ;;  %v734_v25 = vadd.s32 127, %v733_v59  ;;  %v802_v54 = vsel %vm794_vm9, %v785_v45, %v801_v9  ;;  %v804_v43 = vsel %vm792_vm4, %v782_v18, %v785_v45 }
  0xb8   :  { %3052 = vsinq.f32 %v642_v35  ;;  %v803_v42 = vsel %vm793_vm8, %v800_v53, %v802_v54  ;;  %v805_v58 = vsel %vm795_vm5, %v791_v30, 1326507024  ;;  %v2476_v24 = vadd.s32 4294967169, %v867_v33 }
  0xb9   :  { %2716 = vmatpush3.bf16.msra.mxu1 %v3944_v46  ;;  %v732_v50 = vor.u32 %v731_v26, %v730_v28  ;;  %v735_v12 = vshll.u32 %v734_v25, 23  ;;  %v799_v15 = vsel %vm793_vm8, %v796_v51, %v798_v21  ;;  %v806_v18 = vsel %vm794_vm9, %v788_v56, %v805_v58  ;;  %v4015_v25 = vld [vmem:[#allocation2 + $0x158] ss:$12 sps:$4 sm:$0xff]  }
  0xba   :  { %2717 = vmatprep.subr.bf16.mxu1 %v3232_v10  ;;  %v807_v45 = vsel %vm793_vm8, %v804_v43, %v806_v18  ;;  %v3976_v2 = vmul.u32.u64.low %v3905_v17, %v803_v42  ;;  %v3977_v33 = vmul.u32.u64.high %v3905_v17, %v803_v42, %v3976_v2  ;;  %v873_v20 = vadd.s32 1, %v2476_v24 }
  0xbb   :  { %v736_v30 = vor.u32 4788187, %v735_v12  ;;  %v739_v53 = vcvt.s32.f32 %v732_v50  ;;  %v3981_v35 = vmul.u32.u64.low %v3905_v17, %v807_v45  ;;  %v3982_v36 = vmul.u32.u64.high %v3905_v17, %v807_v45, %v3981_v35 }
  0xbc   :  { %v744_v56 = vsel %vm659_vm6, %v743_v31, %v3880_v23  ;;  %vm874_vm10 = vcmp.gt.s32.totalorder %v873_v20, 0  ;;  %v3996_v28 = vand.u32 3, %v643_v57  ;;  %v815_v51 = vmul.u32 %v3905_v17, %v799_v15 }
  0xbd   :  { %2718 = vmatpush3.bf16.msra.mxu1 %v3966_v63  ;;  %v737_v59 = vand.u32 2147483647, %v736_v30  ;;  %v875_v21 = vsel %vm874_vm10, %v873_v20, 0  ;;  %vm4002_vm11 = vcmp.le.f32.partialorder %v657_v11, 0.7853982  ;;  %v818_v31 = vadd.s32 1, %v3977_v33 }
  0xbe   :  { %2719 = vmatprep.subr.bf16.mxu1 %v3232_v10  ;;  %v870_v6 = vand.u32 8388607, %v863_v22  ;;  %v877_v55 = vand.u32 31, %v875_v21  ;;  %v746_v9 = vsel %vm4002_vm11, 0, %v744_v56  ;;  %vm817_vm12 = vc.u32 %v3982_v36, %v3976_v2  ;;  %v4035_v56 = vld [vmem:[#allocation2 + $0x170] ss:$12 sps:$4 sm:$0xff]  }
  0xbf   :  { %v740_v57 = vmul.f32 %v739_v53, %v737_v59  ;;  %v819_v26 = vsel %vm817_vm12, %v818_v31, %v3977_v33  ;;  %vm649_vm13 = vcmp.eq.s32.totalorder %v3996_v28, 0  ;;  %vm652_vm14 = vcmp.eq.s32.totalorder %v3996_v28, 2 }
  0xc0   :  { %v3051_v17 = vpop.eup %3050  ;;  %v878_v11 = vsub.s32 32, %v877_v55  ;;  %v820_v43 = vadd.s32 %v819_v26, %v815_v51  ;;  %v4020_v58 = vand.u32 3, %v746_v9  ;;  %v871_v24 = vor.u32 8388608, %v870_v6 }
  0xc1   :  { %2720 = vmatpush3.bf16.msra.mxu1 %v3990_v14  ;;  %v741_v54 = vxor.u32 2147483648, %v740_v57  ;;  %v880_v50 = vshll.u32 %v3226_v60, %v877_v55  ;;  %vm648_vm15 = vcmp.lt.s32.totalorder %v3996_v28, 2  ;;  %v883_v45 = vshll.u32 %v3227_v62, %v877_v55 }
  0xc2   :  { %2721 = vmatprep.subr.bf16.mxu1 %v3232_v10  ;;  %v3053_v42 = vpop.eup %3052  ;;  %v881_v12 = vshrl.u32 %v3227_v62, %v878_v11  ;;  %v821_v18 = vadd.s32 536870912, %v820_v43  ;;  %v884_v33 = vshrl.u32 %v3228_v1, %v878_v11  ;;  %v876_v30 = vshrl.u32 %v875_v21, 5 }
  0xc3   :  { %v742_v15 = vsel %vm659_vm6, %v741_v54, %v740_v57  ;;  %v886_v53 = vshll.u32 %v3228_v1, %v877_v55  ;;  %v887_v35 = vshrl.u32 %v3229_v3, %v878_v11  ;;  %v650_v59 = vxor.u32 2147483648, %v3053_v42 }
  0xc4   :  { %v745_v20 = vsel %vm4002_vm11, %v3611_v47, %v742_v15  ;;  %v653_v51 = vxor.u32 2147483648, %v3051_v17  ;;  %v4037_v31 = vshrl.u32 %v821_v18, 30  ;;  %v882_v62 = vor.u32 %v881_v12, %v880_v50 }
  0xc5   :  { %2722 = vmatpush3.bf16.msra.mxu1 %v4015_v25  ;;  %3054 = vcosq.f32 %v745_v20  ;;  %v889_v23 = vshll.u32 %v3229_v3, %v877_v55  ;;  %v890_v21 = vshrl.u32 %v3230_v5, %v878_v11  ;;  %v885_v6 = vor.u32 %v884_v33, %v883_v45 }
  0xc6   :  { %2723 = vmatprep.subr.bf16.mxu1 %v3232_v10  ;;  %3056 = vsinq.f32 %v745_v20  ;;  %v823_v1 = vshll.u32 %v4037_v31, 30  ;;  %v892_v57 = vshll.u32 %v3230_v5, %v877_v55  ;;  %v893_v9 = vshrl.u32 %v3231_v13, %v878_v11 }
  0xc7   :  { %v879_v26 = vshrl.u32 %v3226_v60, %v878_v11  ;;  %v888_v54 = vor.u32 %v887_v35, %v886_v53  ;;  %v891_v15 = vor.u32 %v890_v21, %v889_v23  ;;  %vm895_vm0 = vcmp.lt.s32.totalorder %v876_v30, 1 }
  0xc8   :  { %v4047_v18 = vsub.s32 %v820_v43, %v823_v1  ;;  %v894_v50 = vor.u32 %v893_v9, %v892_v57  ;;  %vm897_vm1 = vcmp.lt.s32.totalorder %v876_v30, 3  ;;  %vm898_vm2 = vcmp.lt.s32.totalorder %v876_v30, 4 }
  0xc9   :  { %2724 = vmatpush3.bf16.msra.mxu1 %v4035_v56  ;;  %v651_v3 = vsel %vm649_vm13, %v3051_v17, %v650_v59  ;;  %v654_v5 = vsel %vm652_vm14, %v653_v51, %v3053_v42  ;;  %v900_v13 = vsel %vm898_vm2, %v888_v54, 2102212464  ;;  %v911_v60 = vshll.u32 %v871_v24, 8 }
  0xca   :  { %2729 = vmatprep.subr.bf16.mxu1 %v3232_v10  ;;  %v826_v55 = vsub.s32 0, %v4047_v18  ;;  %vm896_vm3 = vcmp.lt.s32.totalorder %v876_v30, 2  ;;  %v903_v11 = vsel %vm895_vm0, %v882_v62, %v885_v6  ;;  %v904_v43 = vsel %vm898_vm2, %v891_v15, 920167782 }
  0xcb   :  { %vm646_vm4 = vweird.f32 %v3565_v44  ;;  %v905_v12 = vsel %vm897_vm1, %v888_v54, %v904_v43  ;;  %v907_v45 = vsel %vm895_vm0, %v885_v6, %v888_v54  ;;  %v908_v33 = vsel %vm898_vm2, %v894_v50, 1326507024 }
  0xcc   :  { %vm752_vm5 = vcmp.eq.s32.totalorder %v4020_v58, 0  ;;  %v2473_v17 = vmin.u32 %v826_v55, %v4047_v18  ;;  %v899_v42 = vsel %vm895_vm0, %v879_v26, %v882_v62  ;;  %v901_v24 = vsel %vm897_vm1, %v885_v6, %v900_v13 }
  0xcd   :  { %v655_v20 = vsel %vm648_vm15, %v651_v3, %v654_v5  ;;  %vm755_vm6 = vcmp.eq.s32.totalorder %v4020_v58, 2  ;;  %v906_v53 = vsel %vm896_vm3, %v903_v11, %v905_v12  ;;  %v909_v35 = vsel %vm897_vm1, %v891_v15, %v908_v33 }
  0xce   :  { %v828_v51 = vclz %v2473_v17  ;;  %v910_v23 = vsel %vm896_vm3, %v907_v45, %v909_v35  ;;  %v4069_v21 = vmul.u32.u64.low %v911_v60, %v906_v53  ;;  %v4070_v1 = vmul.u32.u64.high %v911_v60, %v906_v53, %v4069_v21 }
  0xcf   :  { %v3055_v59 = vpop.eup %3054  ;;  %v902_v6 = vsel %vm896_vm3, %v899_v42, %v901_v24  ;;  %v4073_v9 = vmul.u32.u64.low %v911_v60, %v910_v23  ;;  %v4074_v28 = vmul.u32.u64.high %v911_v60, %v910_v23, %v4073_v9  ;;  %vm751_vm7 = vcmp.lt.s32.totalorder %v4020_v58, 2 }
  0xd0   :  { %v3057_v57 = vpop.eup %3056  ;;  %v756_v62 = vxor.u32 2147483648, %v3055_v59  ;;  %v2474_v54 = vadd.s32 4294967294, %v828_v51  ;;  %v656_v15 = vsel %vm646_vm4, nan, %v655_v20  ;;  %vm749_vm8 = vweird.f32 %v3611_v47 }
  0xd1   :  { %v753_v26 = vxor.u32 2147483648, %v3057_v57  ;;  %v816_v3 = vadd.s32 %v3976_v2, %v3982_v36  ;;  %v918_v5 = vmul.u32 %v911_v60, %v902_v6  ;;  %v921_v13 = vadd.s32 1, %v4070_v1 }
  0xd2   :  { %v757_v50 = vsel %vm755_vm6, %v756_v62, %v3057_v57  ;;  %vm2475_vm9 = vcmp.lt.s32.totalorder %v2474_v54, 0  ;;  %vm920_vm10 = vc.u32 %v4074_v28, %v4069_v21  ;;  %vm762_vm11 = vcmp.lt.s32.totalorder %v3838_v61, 0 }
  0xd3   :  { %v754_v30 = vsel %vm752_vm5, %v3055_v59, %v753_v26  ;;  %v831_v11 = vsel %vm2475_vm9, 0, %v2474_v54  ;;  %v922_v45 = vsel %vm920_vm10, %v921_v13, %v4070_v1  ;;  %v919_v9 = vadd.s32 %v4069_v21, %v4074_v28 }
  0xd4   :  { %v758_v55 = vsel %vm751_vm7, %v754_v30, %v757_v50  ;;  %v832_v43 = vsub.s32 32, %v831_v11  ;;  %v836_v47 = vsub.s32 4294967266, %v831_v11  ;;  %v833_v33 = vshll.u32 %v4047_v18, %v831_v11 }
  0xd5   :  { %v759_v44 = vsel %vm749_vm8, nan, %v758_v55  ;;  %v923_v58 = vadd.s32 %v922_v45, %v918_v5  ;;  %vm4095_vm13 = vcmp.le.f32.partialorder %v760_v34, 0.7853982  ;;  %vm865_vm14 = vcmp.lt.s32.totalorder %v3878_v40, 0 }
  0xd6   :  { %v968_v12 = vpack.c.bf16 %v759_v44, %v656_v15  ;;  %v834_v2 = vshrl.u32 %v816_v3, %v832_v43  ;;  %v837_v36 = vadd.s32 127, %v836_v47  ;;  %v846_v44 = vsub.s32 4, %v4037_v31 }
  0xd7   :  { %v924_v17 = vadd.s32 536870912, %v923_v58  ;;  %vm4111_vm15 = vcmp.le.f32.partialorder %v863_v22, 0.7853982  ;;  %vm852_vm4 = vweird.f32 %v3838_v61  ;;  %vm955_vm7 = vweird.f32 %v3878_v40 }
  0xd8   :  { %1151 = vmatmul.mubr.bf16.gmra.mrb[8].mxu0 %v968_v12  ;;  %2705 = vmatprep.mubr.bf16.mxu1 %v968_v12  ;;  %v838_v60 = vshll.u32 %v837_v36, 23  ;;  %v835_v42 = vor.u32 %v834_v2, %v833_v33  ;;  %v847_v12 = vsel %vm762_vm11, %v846_v44, %v4037_v31  ;;  %vm3233_vm8 = vmmov 0  }
  0xd9   :  { %1160 = vmatprep.mubr.bf16.mxu0 %v4649_v0  ;;  %v925_v20 = vshrl.u32 %v924_v17, 30  ;;  %v849_v36 = vsel %vm4095_vm13, 0, %v847_v12 }
  0xda   :  { %v839_v24 = vor.u32 4788187, %v838_v60  ;;  %v842_v59 = vcvt.s32.f32 %v835_v42 }
  0xdb   :  { %v926_v53 = vshll.u32 %v925_v20, 30  ;;  %v949_v2 = vsub.s32 4, %v925_v20 }
  0xdc   :  { %v840_v35 = vand.u32 2147483647, %v839_v24  ;;  %v853_v24 = vand.u32 3, %v849_v36 }
  0xdd   :  { %v927_v51 = vsub.s32 %v923_v58, %v926_v53  ;;  %v950_v31 = vsel %vm865_vm14, %v949_v2, %v925_v20 }
  0xde   :  { %v843_v1 = vmul.f32 %v842_v59, %v840_v35  ;;  %v952_v22 = vsel %vm4111_vm15, 0, %v950_v31  ;;  %vm855_vm0 = vcmp.eq.s32.totalorder %v853_v24, 0  ;;  %vm858_vm1 = vcmp.eq.s32.totalorder %v853_v24, 2 }
  0xdf   :  { %v929_v23 = vsub.s32 0, %v927_v51  ;;  %v956_v59 = vand.u32 3, %v952_v22  ;;  %vm854_vm2 = vcmp.lt.s32.totalorder %v853_v24, 2 }
  0xe0   :  { %v844_v62 = vxor.u32 2147483648, %v843_v1 }
  0xe1   :  { %v2477_v57 = vmin.u32 %v929_v23, %v927_v51  ;;  %vm961_vm3 = vcmp.eq.s32.totalorder %v956_v59, 2  ;;  %vm958_vm5 = vcmp.eq.s32.totalorder %v956_v59, 0  ;;  %vm957_vm6 = vcmp.lt.s32.totalorder %v956_v59, 2 }
  0xe2   :  { %v845_v15 = vsel %vm762_vm11, %v844_v62, %v843_v1 }
  0xe3   :  { %v931_v18 = vclz %v2477_v57  ;;  %v848_v21 = vsel %vm4095_vm13, %v3838_v61, %v845_v15  ;;  %v4129_v61 = vld [vmem:[#allocation2 + $0xc0] ss:$12 sps:$4 sm:$0xff]  }
  0xe4   :  { %3058 = vcosq.f32 %v848_v21 }
  0xe5   :  { %v2478_v6 = vadd.s32 4294967294, %v931_v18  ;;  %3060 = vsinq.f32 %v848_v21 }
  0xe7   :  { %vm2479_vm12 = vcmp.lt.s32.totalorder %v2478_v6, 0 }
  0xe8   :  { %v934_v54 = vsel %vm2479_vm12, 0, %v2478_v6 }
  0xe9   :  { %v935_v50 = vsub.s32 32, %v934_v54  ;;  %v936_v3 = vshll.u32 %v927_v51, %v934_v54  ;;  %v939_v30 = vsub.s32 4294967266, %v934_v54 }
  0xeb   :  { %v937_v5 = vshrl.u32 %v919_v9, %v935_v50  ;;  %v940_v13 = vadd.s32 127, %v939_v30  ;;  %v4144_v30 = vld [vmem:[#allocation2 + $0xf4] ss:$12 sps:$4 sm:$0xff]  }
  0xed   :  { %v938_v28 = vor.u32 %v937_v5, %v936_v3  ;;  %v941_v55 = vshll.u32 %v940_v13, 23  ;;  %v4140_v3 = vld [vmem:[#allocation2 + $0xd8] ss:$12 sps:$4 sm:$0xff]  }
  0xee   :  { %v3059_v17 = vpop.eup %3058 }
  0xef   :  { %v942_v34 = vor.u32 4788187, %v941_v55  ;;  %v945_v11 = vcvt.s32.f32 %v938_v28  ;;  %v3061_v42 = vpop.eup %3060  ;;  %v859_v35 = vxor.u32 2147483648, %v3059_v17 }
  0xf0   :  { %v856_v53 = vxor.u32 2147483648, %v3061_v42 }
  0xf1   :  { %v943_v43 = vand.u32 2147483647, %v942_v34  ;;  %v860_v23 = vsel %vm858_vm1, %v859_v35, %v3061_v42 }
  0xf2   :  { %v857_v51 = vsel %vm855_vm0, %v3059_v17, %v856_v53 }
  0xf3   :  { %v946_v47 = vmul.f32 %v945_v11, %v943_v43  ;;  %v861_v20 = vsel %vm854_vm2, %v857_v51, %v860_v23  ;;  %vm2428_vm2 = vcmask 261120  }
  0xf4   :  { %v862_v9 = vsel %vm852_vm4, nan, %v861_v20 }
  0xf5   :  { %v947_v33 = vxor.u32 2147483648, %v946_v47 }
  0xf7   :  { %v948_v58 = vsel %vm865_vm14, %v947_v33, %v946_v47 }
  0xf8   :  { %v951_v60 = vsel %vm4111_vm15, %v3878_v40, %v948_v58  ;;  %v4133_v40 = vld [vmem:[#allocation2 + $0xdc] ss:$12 sps:$4 sm:$0xff]  }
  0xf9   :  { %3062 = vcosq.f32 %v951_v60 }
  0xfa   :  { %3064 = vsinq.f32 %v951_v60 }
 0x103   :  { %v3063_v1 = vpop.eup %3062 }
 0x104   :  { %v3065_v57 = vpop.eup %3064  ;;  %v962_v18 = vxor.u32 2147483648, %v3063_v1 }
 0x105   :  { %v959_v62 = vxor.u32 2147483648, %v3065_v57 }
 0x106   :  { %v963_v6 = vsel %vm961_vm3, %v962_v18, %v3065_v57  ;;  %v4217_v57 = vld [vmem:[%s4645_s2 + $0xa] ss:$0 sm:$0xff] }
 0x107   :  { %v960_v26 = vsel %vm958_vm5, %v3063_v1, %v959_v62 }
 0x108   :  { %v964_v54 = vsel %vm957_vm6, %v960_v26, %v963_v6 }
 0x109   :  { %v965_v15 = vsel %vm955_vm7, nan, %v964_v54  ;;  %v4223_v54 = vld [vmem:[%s4645_s2] sm:$0xff] }
 0x10a   :  { %v969_v50 = vpack.c.bf16 %v965_v15, %v862_v9  ;;  %vm1467_vm9 = vcmp.gt.f32.partialorder %v4223_v54, 0.0  ;;  %vm1573_vm11 = vcmp.gt.f32.partialorder %v4223_v54, 1.0  ;;  %vm1679_vm12 = vcmp.gt.f32.partialorder %v4223_v54, 2.0 }
 0x10b   :  { %vm2530_vm10 = vmpackc.low %vm1467_vm9, %vm1467_vm9  ;;  %vm1785_vm13 = vcmp.gt.f32.partialorder %v4223_v54, 3.0  ;;  %vm1891_vm14 = vcmp.gt.f32.partialorder %v4223_v54, 4.0  ;;  %vm1997_vm15 = vcmp.gt.f32.partialorder %v4223_v54, 5.0  ;;  %vm2103_vm0 = vcmp.gt.f32.partialorder %v4223_v54, 6.0  ;;  %v3019_v54 = vld [vmem:[%s4647_s4 + $0x40] sm:$0xff]  }
 0x10c   :  { %1161 = vmatmul.mubr.bf16.gmra.mrb[12].mxu0 %v969_v50  ;;  %2706 = vmatmul.mubr.bf16.gmra.mrb[4].mxu1 %v969_v50 }
 0x10d   :  { %1396 = vmatprep.mubr.bf16.mxu0 %v4649_v0  ;;  %2725 = vmatprep.mubr.msk.bf16.mxu1 %vm3233_vm8, %v3232_v10 }
 0x114   :  { %1397 = vmatmul.mubr.bf16.vlgmr.msra.gmra.mrb[16].mxu0 %v4649_v0  ;;  %2726 = vmatmul.mubr.bf16.vlgmr.msra.gmra.mrb[8].mxu1 %v4649_v0 }
 0x115   :  { %1471 = vmatpush1.bf16.msra.mxu0 %v4129_v61  ;;  %2730 = vmatpush3.bf16.msra.mxu1 %v3894_v41 }
 0x116   :  { %1472 = vmatprep.subr.bf16.mxu0 %v4133_v40  ;;  %2731 = vmatprep.subr.bf16.mxu1 %v3232_v10 }
 0x117   :  { %1502 = vmatprep.mubr.bf16.mxu0 %v4649_v0  ;;  %2745 = vmatprep.mubr.msk.bf16.mxu1 %vm3233_vm8, %v3232_v10 }
 0x119   :  { %1473 = vmatpush1.bf16.msra.mxu0 %v4140_v3  ;;  %2732 = vmatpush3.bf16.msra.mxu1 %v3912_v52 }
 0x11a   :  { %1474 = vmatprep.subr.bf16.mxu0 %v4144_v30  ;;  %2733 = vmatprep.subr.bf16.mxu1 %v3232_v10 }
 0x11d   :  { %1475 = vmatpush1.bf16.msra.mxu0 %v3660_v37  ;;  %2734 = vmatpush3.bf16.msra.mxu1 %v3927_v27 }
 0x11e   :  { %1476 = vmatprep.subr.bf16.mxu0 %v3667_v7  ;;  %2735 = vmatprep.subr.bf16.mxu1 %v3232_v10 }
 0x121   :  { %1477 = vmatpush1.bf16.msra.mxu0 %v3681_v29  ;;  %2736 = vmatpush3.bf16.msra.mxu1 %v3944_v46 }
 0x122   :  { %1478 = vmatprep.subr.bf16.mxu0 %v3686_v4  ;;  %2737 = vmatprep.subr.bf16.mxu1 %v3232_v10 }
 0x125   :  { %1479 = vmatpush1.bf16.msra.mxu0 %v3706_v16  ;;  %2738 = vmatpush3.bf16.msra.mxu1 %v3966_v63 }
 0x126   :  { %1480 = vmatprep.subr.bf16.mxu0 %v3715_v49  ;;  %2739 = vmatprep.subr.bf16.mxu1 %v3232_v10 }
 0x129   :  { %1481 = vmatpush1.bf16.msra.mxu0 %v3734_v39  ;;  %2740 = vmatpush3.bf16.msra.mxu1 %v3990_v14 }
 0x12a   :  { %1482 = vmatprep.subr.bf16.mxu0 %v3742_v32  ;;  %2741 = vmatprep.subr.bf16.mxu1 %v3232_v10 }
 0x12d   :  { %1483 = vmatpush1.bf16.msra.mxu0 %v3760_v38  ;;  %2742 = vmatpush3.bf16.msra.mxu1 %v4015_v25 }
 0x12e   :  { %1484 = vmatprep.subr.bf16.mxu0 %v3765_v8  ;;  %2743 = vmatprep.subr.bf16.mxu1 %v3232_v10 }
 0x131   :  { %1485 = vmatpush1.bf16.msra.mxu0 %v3782_v19  ;;  %2744 = vmatpush3.bf16.msra.mxu1 %v4035_v56 }
 0x132   :  { %1576 = vmatprep.subr.bf16.mxu0 %v3805_v48  ;;  %2749 = vmatprep.subr.bf16.mxu1 %v3232_v10 }
 0x14b   :  { %v1132_v37 = vpop.f32.mrb[0].mxu0 }
 0x14c   :  { %v1134_v7 = vpop.f32.mrb[1].mxu0 }
 0x14d   :  { %v4172_v29 = vpop.f32.mrb[2].mxu0 }
 0x14e   :  { %v4174_v4 = vpop.f32.mrb[3].mxu0 }
 0x17f   :  { %v4176_v16 = vpop.f32.mrb[4].mxu0  ;;  %v4178_v49 = vpop.f32.mrb[0].mxu1 }
 0x180   :  { %v4180_v39 = vpop.f32.mrb[5].mxu0  ;;  %v1205_v32 = vpop.f32.mrb[1].mxu1 }
 0x181   :  { %v4182_v38 = vpop.f32.mrb[6].mxu0  ;;  %v4184_v8 = vpop.f32.mrb[2].mxu1 }
 0x182   :  { %v4186_v19 = vpop.f32.mrb[7].mxu0  ;;  %v4188_v5 = vpop.f32.mrb[3].mxu1 }
 0x1ab   :  { %v4190_v13 = vpop.f32.mrb[8].mxu0 }
 0x1ac   :  { %v4192_v21 = vpop.f32.mrb[9].mxu0 }
 0x1ad   :  { %v4194_v28 = vpop.f32.mrb[10].mxu0 }
 0x1ae   :  { %v4196_v55 = vpop.f32.mrb[11].mxu0 }
 0x1df   :  { %v4198_v34 = vpop.f32.mrb[12].mxu0  ;;  %v4200_v11 = vpop.f32.mrb[4].mxu1 }
 0x1e0   :  { %v4202_v44 = vpop.f32.mrb[13].mxu0  ;;  %v4204_v43 = vpop.f32.mrb[5].mxu1 }
 0x1e1   :  { %v4206_v47 = vpop.f32.mrb[14].mxu0  ;;  %v4208_v12 = vpop.f32.mrb[6].mxu1 }
 0x1e2   :  { %v4210_v45 = vpop.f32.mrb[15].mxu0  ;;  %v4212_v33 = vpop.f32.mrb[7].mxu1 }
 0x1e7   :  { %v1398_v2 = vpop.f32.mrb[16].mxu0  ;;  %v1439_v36 = vpop.f32.mrb[8].mxu1 }
 0x1e8   :  { %v1445_v58 = vadd.f32 %v1398_v2, %v1132_v37  ;;  %v1400_v60 = vpop.f32.mrb[17].mxu0  ;;  %v2727_v17 = vpop.f32.mrb[9].mxu1  ;;  %v1459_v18 = vadd.f32 %v4217_v57, %v1439_v36  ;;  %v4244_v36 = vld [vmem:[#allocation2 + $0xf0] ss:$12 sps:$4 sm:$0xff]  }
 0x1e9   :  { %v1446_v31 = vadd.f32 %v1400_v60, %v1134_v7  ;;  %v1402_v42 = vpop.f32.mrb[18].mxu0  ;;  %v1442_v24 = vpop.f32.mrb[10].mxu1  ;;  %v4252_v60 = vld [vmem:[#allocation2 + $0x108] ss:$12 sps:$4 sm:$0xff]   ;;  %v4256_v17 = vld [vmem:[#allocation2 + $0x124] ss:$12 sps:$4 sm:$0xff]  }
 0x1ea   :  { %v2528_v22 = vmul.f32 -1.442695, %v1445_v58  ;;  %v1403_v53 = vpop.f32.mrb[19].mxu0  ;;  %v2728_v35 = vpop.f32.mrb[11].mxu1  ;;  %v4248_v58 = vld [vmem:[#allocation2 + $0x10c] ss:$12 sps:$4 sm:$0xff]  }
 0x1eb   :  { %v2529_v59 = vmul.f32 -1.442695, %v1446_v31  ;;  %v4260_v31 = vld [vmem:[#allocation2 + $0x120] ss:$12 sps:$4 sm:$0xff]   ;;  %v4264_v42 = vld [vmem:[#allocation2 + $0x13c] ss:$12 sps:$4 sm:$0xff]  }
 0x1ec   :  { %3066 = vpow2.f32 %v2528_v22  ;;  %v4268_v24 = vld [vmem:[#allocation2 + $0x138] ss:$12 sps:$4 sm:$0xff]   ;;  %v4272_v22 = vld [vmem:[#allocation2 + $0x154] ss:$12 sps:$4 sm:$0xff]   ;;  %v4276_v53 = vld [vmem:[#allocation2 + $0x150] ss:$12 sps:$4 sm:$0xff]  }
 0x1ed   :  { %3068 = vpow2.f32 %v2529_v59  ;;  %v4280_v35 = vld [vmem:[#allocation2 + $0x16c] ss:$12 sps:$4 sm:$0xff]   ;;  %v4284_v59 = vld [vmem:[#allocation2 + $0x168] ss:$12 sps:$4 sm:$0xff]  }
 0x1f6   :  { %v3067_v51 = vpop.eup %3066 }
 0x1f7   :  { %v1453_v23 = vadd.f32 1.0, %v3067_v51  ;;  %v3069_v1 = vpop.eup %3068 }
 0x1f8   :  { %v1454_v20 = vadd.f32 1.0, %v3069_v1 }
 0x1f9   :  { %3070 = vrcp.f32 %v1453_v23 }
 0x1fa   :  { %3072 = vrcp.f32 %v1454_v20 }
 0x203   :  { %v3071_v62 = vpop.eup %3070 }
 0x204   :  { %v1460_v6 = vmul.f32 %v3071_v62, %v1459_v18  ;;  %v3073_v26 = vpop.eup %3072 }
 0x205   :  { %v1463_v15 = vsub.f32 1.0, %v3073_v26  ;;  %v1465_v7 = vmul.f32 0.0, %v3073_v26 }
 0x206   :  { %v1461_v9 = vadd.f32 %v1460_v6, %v1205_v32 }
 0x208   :  { %3074 = vtanh.f32 %v1461_v9 }
 0x212   :  { %v3075_v50 = vpop.eup %3074 }
 0x213   :  { %v1464_v37 = vmul.f32 %v3075_v50, %v1463_v15 }
 0x215   :  { %v4226_v2 = vadd.f32 %v1465_v7, %v1464_v37 }
 0x217   :  { %v2531_v32 = vpack.c.bf16 %v4226_v2, %v4226_v2 }
 0x219   :  { %2532 = vmatmul.mubr.msk.bf16.vlgmr.msra.gmra.mrb[20].mxu0 %vm2530_vm10, %v2531_v32  ;;  %2746 = vmatmul.mubr.msk.bf16.vlgmr.msra.gmra.mrb[12].mxu1 %vm2530_vm10, %v2531_v32 }
 0x21a   :  { %1577 = vmatpush1.bf16.msra.mxu0 %v4129_v61  ;;  %2750 = vmatpush3.bf16.msra.mxu1 %v3894_v41 }
 0x21b   :  { %1578 = vmatprep.subr.bf16.mxu0 %v4133_v40  ;;  %2751 = vmatprep.subr.bf16.mxu1 %v3232_v10 }
 0x21c   :  { %1608 = vmatprep.mubr.bf16.mxu0 %v4649_v0  ;;  %2765 = vmatprep.mubr.msk.bf16.mxu1 %vm3233_vm8, %v3232_v10 }
 0x21e   :  { %1579 = vmatpush1.bf16.msra.mxu0 %v4140_v3  ;;  %2752 = vmatpush3.bf16.msra.mxu1 %v3912_v52 }
 0x21f   :  { %1580 = vmatprep.subr.bf16.mxu0 %v4144_v30  ;;  %2753 = vmatprep.subr.bf16.mxu1 %v3232_v10 }
 0x222   :  { %1581 = vmatpush1.bf16.msra.mxu0 %v4244_v36  ;;  %2754 = vmatpush3.bf16.msra.mxu1 %v3927_v27 }
 0x223   :  { %1582 = vmatprep.subr.bf16.mxu0 %v4248_v58  ;;  %2755 = vmatprep.subr.bf16.mxu1 %v3232_v10 }
 0x226   :  { %1583 = vmatpush1.bf16.msra.mxu0 %v4252_v60  ;;  %2756 = vmatpush3.bf16.msra.mxu1 %v3944_v46 }
 0x227   :  { %1584 = vmatprep.subr.bf16.mxu0 %v4256_v17  ;;  %2757 = vmatprep.subr.bf16.mxu1 %v3232_v10 }
 0x22a   :  { %1585 = vmatpush1.bf16.msra.mxu0 %v4260_v31  ;;  %2758 = vmatpush3.bf16.msra.mxu1 %v3966_v63 }
 0x22b   :  { %1586 = vmatprep.subr.bf16.mxu0 %v4264_v42  ;;  %2759 = vmatprep.subr.bf16.mxu1 %v3232_v10 }
 0x22e   :  { %1587 = vmatpush1.bf16.msra.mxu0 %v4268_v24  ;;  %2760 = vmatpush3.bf16.msra.mxu1 %v3990_v14 }
 0x22f   :  { %1588 = vmatprep.subr.bf16.mxu0 %v4272_v22  ;;  %2761 = vmatprep.subr.bf16.mxu1 %v3232_v10 }
 0x232   :  { %1589 = vmatpush1.bf16.msra.mxu0 %v4276_v53  ;;  %2762 = vmatpush3.bf16.msra.mxu1 %v4015_v25 }
 0x233   :  { %1590 = vmatprep.subr.bf16.mxu0 %v4280_v35  ;;  %2763 = vmatprep.subr.bf16.mxu1 %v3232_v10 }
 0x236   :  { %1591 = vmatpush1.bf16.msra.mxu0 %v4284_v59  ;;  %2764 = vmatpush3.bf16.msra.mxu1 %v4035_v56 }
 0x237   :  { %1682 = vmatprep.subr.bf16.mxu0 %v3805_v48  ;;  %2769 = vmatprep.subr.bf16.mxu1 %v3232_v10 }
 0x2ec   :  { %v1504_v51 = vpop.f32.mrb[20].mxu0  ;;  %v1545_v23 = vpop.f32.mrb[12].mxu1 }
 0x2ed   :  { %v1551_v1 = vadd.f32 %v1504_v51, %v4172_v29  ;;  %v1506_v20 = vpop.f32.mrb[21].mxu0  ;;  %v2747_v18 = vpop.f32.mrb[13].mxu1  ;;  %v1565_v29 = vadd.f32 %v4217_v57, %v1545_v23 }
 0x2ee   :  { %v1552_v62 = vadd.f32 %v1506_v20, %v4174_v4  ;;  %v1508_v6 = vpop.f32.mrb[22].mxu0  ;;  %v1548_v9 = vpop.f32.mrb[14].mxu1  ;;  %v1468_v4 = vsel %vm1467_vm9, %v4226_v2, 0.0 }
 0x2ef   :  { %v2536_v26 = vmul.f32 -1.442695, %v1551_v1  ;;  %v1509_v15 = vpop.f32.mrb[23].mxu0  ;;  %v2748_v50 = vpop.f32.mrb[15].mxu1 }
 0x2f0   :  { %v2537_v37 = vmul.f32 -1.442695, %v1552_v62 }
 0x2f1   :  { %3076 = vpow2.f32 %v2536_v26 }
 0x2f2   :  { %3078 = vpow2.f32 %v2537_v37 }
 0x2fb   :  { %v3077_v7 = vpop.eup %3076 }
 0x2fc   :  { %v3079_v48 = vpop.eup %3078  ;;  %v1559_v32 = vadd.f32 1.0, %v3077_v7 }
 0x2fd   :  { %v1560_v0 = vadd.f32 1.0, %v3079_v48 }
 0x2fe   :  { %3080 = vrcp.f32 %v1559_v32 }
 0x2ff   :  { %3082 = vrcp.f32 %v1560_v0 }
 0x308   :  { %v3081_v51 = vpop.eup %3080 }
 0x309   :  { %v3083_v18 = vpop.eup %3082  ;;  %v1566_v1 = vmul.f32 %v3081_v51, %v1565_v29 }
 0x30a   :  { %v1571_v20 = vmul.f32 %v3083_v18, %v1468_v4  ;;  %v1569_v6 = vsub.f32 1.0, %v3083_v18 }
 0x30b   :  { %v1567_v62 = vadd.f32 %v1566_v1, %v4188_v5  ;;  %v4667_v5 = vmov 0  }
 0x30d   :  { %3084 = vtanh.f32 %v1567_v62 }
 0x317   :  { %v3085_v9 = vpop.eup %3084 }
 0x318   :  { %v1570_v26 = vmul.f32 %v3085_v9, %v1569_v6 }
 0x31a   :  { %v1572_v15 = vadd.f32 %v1571_v20, %v1570_v26 }
 0x31c   :  { %v4298_v0 = vsel %vm1573_vm11, %v1572_v15, %v1468_v4 }
 0x31d   :  { %v1575_v23 = vpack.c.bf16 %v4298_v0, %v4298_v0 }
 0x31f   :  { %1609 = vmatmul.mubr.bf16.vlgmr.msra.gmra.mrb[24].mxu0 %v1575_v23  ;;  %2766 = vmatmul.mubr.bf16.vlgmr.msra.gmra.mrb[16].mxu1 %v1575_v23 }
 0x320   :  { %1683 = vmatpush1.bf16.msra.mxu0 %v4129_v61  ;;  %2770 = vmatpush3.bf16.msra.mxu1 %v3894_v41  ;;  %v4335_v41 = vld [vmem:[#allocation2 + $0xc4] ss:$12 sps:$4 sm:$0xff]  }
 0x321   :  { %1684 = vmatprep.subr.bf16.mxu0 %v4133_v40  ;;  %2771 = vmatprep.subr.bf16.mxu1 %v3232_v10 }
 0x322   :  { %1714 = vmatprep.mubr.bf16.mxu0 %v4667_v5  ;;  %2785 = vmatprep.mubr.msk.bf16.mxu1 %vm3233_vm8, %v3232_v10 }
 0x324   :  { %1685 = vmatpush1.bf16.msra.mxu0 %v4140_v3  ;;  %2772 = vmatpush3.bf16.msra.mxu1 %v3912_v52 }
 0x325   :  { %1686 = vmatprep.subr.bf16.mxu0 %v4144_v30  ;;  %2773 = vmatprep.subr.bf16.mxu1 %v3232_v10 }
 0x328   :  { %1687 = vmatpush1.bf16.msra.mxu0 %v4244_v36  ;;  %2774 = vmatpush3.bf16.msra.mxu1 %v3927_v27 }
 0x329   :  { %1688 = vmatprep.subr.bf16.mxu0 %v4248_v58  ;;  %2775 = vmatprep.subr.bf16.mxu1 %v3232_v10 }
 0x32c   :  { %1689 = vmatpush1.bf16.msra.mxu0 %v4252_v60  ;;  %2776 = vmatpush3.bf16.msra.mxu1 %v3944_v46 }
 0x32d   :  { %1690 = vmatprep.subr.bf16.mxu0 %v4256_v17  ;;  %2777 = vmatprep.subr.bf16.mxu1 %v3232_v10 }
 0x330   :  { %1691 = vmatpush1.bf16.msra.mxu0 %v4260_v31  ;;  %2778 = vmatpush3.bf16.msra.mxu1 %v3966_v63 }
 0x331   :  { %1692 = vmatprep.subr.bf16.mxu0 %v4264_v42  ;;  %2779 = vmatprep.subr.bf16.mxu1 %v3232_v10 }
 0x334   :  { %1693 = vmatpush1.bf16.msra.mxu0 %v4268_v24  ;;  %2780 = vmatpush3.bf16.msra.mxu1 %v3990_v14 }
 0x335   :  { %1694 = vmatprep.subr.bf16.mxu0 %v4272_v22  ;;  %2781 = vmatprep.subr.bf16.mxu1 %v3232_v10 }
 0x338   :  { %1695 = vmatpush1.bf16.msra.mxu0 %v4276_v53  ;;  %2782 = vmatpush3.bf16.msra.mxu1 %v4015_v25 }
 0x339   :  { %1696 = vmatprep.subr.bf16.mxu0 %v4280_v35  ;;  %2783 = vmatprep.subr.bf16.mxu1 %v3232_v10 }
 0x33c   :  { %1697 = vmatpush1.bf16.msra.mxu0 %v4284_v59  ;;  %2784 = vmatpush3.bf16.msra.mxu1 %v4035_v56 }
 0x33d   :  { %1788 = vmatprep.subr.bf16.mxu0 %v4335_v41  ;;  %2789 = vmatprep.subr.bf16.mxu1 %v3232_v10 }
 0x3f2   :  { %v1610_v52 = vpop.f32.mrb[24].mxu0  ;;  %v1651_v2 = vpop.f32.mrb[16].mxu1 }
 0x3f3   :  { %v1657_v50 = vadd.f32 %v1610_v52, %v4176_v16  ;;  %v1612_v37 = vpop.f32.mrb[25].mxu0  ;;  %v2767_v7 = vpop.f32.mrb[17].mxu1  ;;  %v1671_v26 = vadd.f32 %v4217_v57, %v1651_v2 }
 0x3f4   :  { %v1658_v48 = vadd.f32 %v1612_v37, %v4180_v39  ;;  %v1614_v32 = vpop.f32.mrb[26].mxu0  ;;  %v1654_v29 = vpop.f32.mrb[18].mxu1 }
 0x3f5   :  { %v2538_v51 = vmul.f32 -1.442695, %v1657_v50  ;;  %v1615_v18 = vpop.f32.mrb[27].mxu0  ;;  %v2768_v4 = vpop.f32.mrb[19].mxu1 }
 0x3f6   :  { %v2539_v1 = vmul.f32 -1.442695, %v1658_v48 }
 0x3f7   :  { %3086 = vpow2.f32 %v2538_v51 }
 0x3f8   :  { %3088 = vpow2.f32 %v2539_v1 }
 0x401   :  { %v3087_v20 = vpop.eup %3086 }
 0x402   :  { %v1665_v62 = vadd.f32 1.0, %v3087_v20  ;;  %v3089_v6 = vpop.eup %3088 }
 0x403   :  { %v1666_v9 = vadd.f32 1.0, %v3089_v6 }
 0x404   :  { %3090 = vrcp.f32 %v1665_v62 }
 0x405   :  { %3092 = vrcp.f32 %v1666_v9 }
 0x40e   :  { %v3091_v16 = vpop.eup %3090 }
 0x40f   :  { %v1672_v15 = vmul.f32 %v3091_v16, %v1671_v26  ;;  %v3093_v23 = vpop.eup %3092 }
 0x410   :  { %v1675_v52 = vsub.f32 1.0, %v3093_v23  ;;  %v1677_v37 = vmul.f32 %v3093_v23, %v4298_v0 }
 0x411   :  { %v1673_v39 = vadd.f32 %v4178_v49, %v1672_v15  ;;  %v4351_v49 = vld [vmem:[#allocation2 + $0xc8] ss:$12 sps:$4 sm:$0xff]  }
 0x413   :  { %3094 = vtanh.f32 %v1673_v39 }
 0x41d   :  { %v3095_v50 = vpop.eup %3094 }
 0x41e   :  { %v1676_v7 = vmul.f32 %v3095_v50, %v1675_v52 }
 0x420   :  { %v1678_v48 = vadd.f32 %v1677_v37, %v1676_v7 }
 0x422   :  { %v4346_v32 = vsel %vm1679_vm12, %v1678_v48, %v4298_v0  ;;  %v4360_v0 = vld [vmem:[#allocation2 + $0xe0] ss:$12 sps:$4 sm:$0xff]  }
 0x423   :  { %v1681_v2 = vpack.c.bf16 %v4346_v32, %v4346_v32 }
 0x425   :  { %1715 = vmatmul.mubr.bf16.vlgmr.msra.gmra.mrb[28].mxu0 %v1681_v2  ;;  %2786 = vmatmul.mubr.bf16.vlgmr.msra.gmra.mrb[20].mxu1 %v1681_v2 }
 0x426   :  { %1789 = vmatpush1.bf16.msra.mxu0 %v4129_v61  ;;  %2790 = vmatpush3.bf16.msra.mxu1 %v4351_v49 }
 0x427   :  { %1790 = vmatprep.subr.bf16.mxu0 %v4133_v40  ;;  %2791 = vmatprep.subr.bf16.mxu1 %v3232_v10 }
 0x428   :  { %1820 = vmatprep.mubr.bf16.mxu0 %v4667_v5  ;;  %2805 = vmatprep.mubr.msk.bf16.mxu1 %vm3233_vm8, %v3232_v10 }
 0x42a   :  { %1791 = vmatpush1.bf16.msra.mxu0 %v4140_v3  ;;  %2792 = vmatpush3.bf16.msra.mxu1 %v4360_v0 }
 0x42b   :  { %1792 = vmatprep.subr.bf16.mxu0 %v4144_v30  ;;  %2793 = vmatprep.subr.bf16.mxu1 %v3232_v10 }
 0x42e   :  { %1793 = vmatpush1.bf16.msra.mxu0 %v4244_v36  ;;  %2794 = vmatpush3.bf16.msra.mxu1 %v3927_v27 }
 0x42f   :  { %1794 = vmatprep.subr.bf16.mxu0 %v4248_v58  ;;  %2795 = vmatprep.subr.bf16.mxu1 %v3232_v10 }
 0x432   :  { %1795 = vmatpush1.bf16.msra.mxu0 %v4252_v60  ;;  %2796 = vmatpush3.bf16.msra.mxu1 %v3944_v46 }
 0x433   :  { %1796 = vmatprep.subr.bf16.mxu0 %v4256_v17  ;;  %2797 = vmatprep.subr.bf16.mxu1 %v3232_v10 }
 0x436   :  { %1797 = vmatpush1.bf16.msra.mxu0 %v4260_v31  ;;  %2798 = vmatpush3.bf16.msra.mxu1 %v3966_v63 }
 0x437   :  { %1798 = vmatprep.subr.bf16.mxu0 %v4264_v42  ;;  %2799 = vmatprep.subr.bf16.mxu1 %v3232_v10 }
 0x43a   :  { %1799 = vmatpush1.bf16.msra.mxu0 %v4268_v24  ;;  %2800 = vmatpush3.bf16.msra.mxu1 %v3990_v14 }
 0x43b   :  { %1800 = vmatprep.subr.bf16.mxu0 %v4272_v22  ;;  %2801 = vmatprep.subr.bf16.mxu1 %v3232_v10 }
 0x43e   :  { %1801 = vmatpush1.bf16.msra.mxu0 %v4276_v53  ;;  %2802 = vmatpush3.bf16.msra.mxu1 %v4015_v25 }
 0x43f   :  { %1802 = vmatprep.subr.bf16.mxu0 %v4280_v35  ;;  %2803 = vmatprep.subr.bf16.mxu1 %v3232_v10 }
 0x442   :  { %1803 = vmatpush1.bf16.msra.mxu0 %v4284_v59  ;;  %2804 = vmatpush3.bf16.msra.mxu1 %v4035_v56 }
 0x443   :  { %1894 = vmatprep.subr.bf16.mxu0 %v4335_v41  ;;  %2809 = vmatprep.subr.bf16.mxu1 %v3232_v10 }
 0x4f8   :  { %v1716_v27 = vpop.f32.mrb[28].mxu0  ;;  %v1757_v46 = vpop.f32.mrb[20].mxu1 }
 0x4f9   :  { %v1763_v63 = vadd.f32 %v1716_v27, %v4182_v38  ;;  %v1718_v14 = vpop.f32.mrb[29].mxu0  ;;  %v2787_v29 = vpop.f32.mrb[21].mxu1  ;;  %v1777_v15 = vadd.f32 %v4217_v57, %v1757_v46  ;;  %v4424_v46 = vld [vmem:[#allocation2 + $0x128] ss:$12 sps:$4 sm:$0xff]  }
 0x4fa   :  { %v1764_v25 = vadd.f32 %v1718_v14, %v4186_v19  ;;  %v1720_v51 = vpop.f32.mrb[30].mxu0  ;;  %v1760_v18 = vpop.f32.mrb[22].mxu1  ;;  %v4436_v14 = vld [vmem:[#allocation2 + $0x158] ss:$12 sps:$4 sm:$0xff]  }
 0x4fb   :  { %v2540_v4 = vmul.f32 -1.442695, %v1763_v63  ;;  %v1721_v1 = vpop.f32.mrb[31].mxu0  ;;  %v2788_v20 = vpop.f32.mrb[23].mxu1  ;;  %v4430_v63 = vld [vmem:[#allocation2 + $0x140] ss:$12 sps:$4 sm:$0xff]  }
 0x4fc   :  { %v2541_v62 = vmul.f32 -1.442695, %v1764_v25 }
 0x4fd   :  { %3096 = vpow2.f32 %v2540_v4 }
 0x4fe   :  { %3098 = vpow2.f32 %v2541_v62 }
 0x507   :  { %v3097_v6 = vpop.eup %3096 }
 0x508   :  { %v1771_v9 = vadd.f32 1.0, %v3097_v6  ;;  %v3099_v26 = vpop.eup %3098 }
 0x509   :  { %v1772_v16 = vadd.f32 1.0, %v3099_v26 }
 0x50a   :  { %3100 = vrcp.f32 %v1771_v9 }
 0x50b   :  { %3102 = vrcp.f32 %v1772_v16 }
 0x514   :  { %v3101_v38 = vpop.eup %3100 }
 0x515   :  { %v1778_v39 = vmul.f32 %v3101_v38, %v1777_v15  ;;  %v3103_v23 = vpop.eup %3102 }
 0x516   :  { %v1781_v52 = vsub.f32 1.0, %v3103_v23  ;;  %v1783_v37 = vmul.f32 %v3103_v23, %v4346_v32 }
 0x517   :  { %v1779_v19 = vadd.f32 %v4184_v8, %v1778_v39  ;;  %v4412_v8 = vld [vmem:[#allocation2 + $0xf8] ss:$12 sps:$4 sm:$0xff]  }
 0x519   :  { %3104 = vtanh.f32 %v1779_v19 }
 0x523   :  { %v3105_v50 = vpop.eup %3104 }
 0x524   :  { %v1782_v7 = vmul.f32 %v3105_v50, %v1781_v52 }
 0x526   :  { %v1784_v48 = vadd.f32 %v1783_v37, %v1782_v7 }
 0x528   :  { %v4396_v2 = vsel %vm1785_vm13, %v1784_v48, %v4346_v32  ;;  %v4418_v32 = vld [vmem:[#allocation2 + $0x110] ss:$12 sps:$4 sm:$0xff]  }
 0x529   :  { %v1787_v27 = vpack.c.bf16 %v4396_v2, %v4396_v2 }
 0x52b   :  { %1821 = vmatmul.mubr.bf16.vlgmr.msra.gmra.mrb[32].mxu0 %v1787_v27  ;;  %2806 = vmatmul.mubr.bf16.vlgmr.msra.gmra.mrb[24].mxu1 %v1787_v27 }
 0x52c   :  { %1895 = vmatpush1.bf16.msra.mxu0 %v4129_v61  ;;  %2810 = vmatpush3.bf16.msra.mxu1 %v4351_v49 }
 0x52d   :  { %1896 = vmatprep.subr.bf16.mxu0 %v4133_v40  ;;  %2811 = vmatprep.subr.bf16.mxu1 %v3232_v10 }
 0x52e   :  { %1926 = vmatprep.mubr.bf16.mxu0 %v4667_v5  ;;  %2825 = vmatprep.mubr.msk.bf16.mxu1 %vm3233_vm8, %v3232_v10 }
 0x530   :  { %1897 = vmatpush1.bf16.msra.mxu0 %v4140_v3  ;;  %2812 = vmatpush3.bf16.msra.mxu1 %v4360_v0 }
 0x531   :  { %1898 = vmatprep.subr.bf16.mxu0 %v4144_v30  ;;  %2813 = vmatprep.subr.bf16.mxu1 %v3232_v10 }
 0x534   :  { %1899 = vmatpush1.bf16.msra.mxu0 %v4244_v36  ;;  %2814 = vmatpush3.bf16.msra.mxu1 %v4412_v8 }
 0x535   :  { %1900 = vmatprep.subr.bf16.mxu0 %v4248_v58  ;;  %2815 = vmatprep.subr.bf16.mxu1 %v3232_v10 }
 0x538   :  { %1901 = vmatpush1.bf16.msra.mxu0 %v4252_v60  ;;  %2816 = vmatpush3.bf16.msra.mxu1 %v4418_v32 }
 0x539   :  { %1902 = vmatprep.subr.bf16.mxu0 %v4256_v17  ;;  %2817 = vmatprep.subr.bf16.mxu1 %v3232_v10 }
 0x53c   :  { %1903 = vmatpush1.bf16.msra.mxu0 %v4260_v31  ;;  %2818 = vmatpush3.bf16.msra.mxu1 %v4424_v46 }
 0x53d   :  { %1904 = vmatprep.subr.bf16.mxu0 %v4264_v42  ;;  %2819 = vmatprep.subr.bf16.mxu1 %v3232_v10 }
 0x540   :  { %1905 = vmatpush1.bf16.msra.mxu0 %v4268_v24  ;;  %2820 = vmatpush3.bf16.msra.mxu1 %v4430_v63 }
 0x541   :  { %1906 = vmatprep.subr.bf16.mxu0 %v4272_v22  ;;  %2821 = vmatprep.subr.bf16.mxu1 %v3232_v10 }
 0x544   :  { %1907 = vmatpush1.bf16.msra.mxu0 %v4276_v53  ;;  %2822 = vmatpush3.bf16.msra.mxu1 %v4436_v14 }
 0x545   :  { %1908 = vmatprep.subr.bf16.mxu0 %v4280_v35  ;;  %2823 = vmatprep.subr.bf16.mxu1 %v3232_v10 }
 0x548   :  { %1909 = vmatpush1.bf16.msra.mxu0 %v4284_v59  ;;  %2824 = vmatpush3.bf16.msra.mxu1 %v4035_v56 }
 0x549   :  { %2000 = vmatprep.subr.bf16.mxu0 %v4335_v41  ;;  %2829 = vmatprep.subr.bf16.mxu1 %v3232_v10 }
 0x5fe   :  { %v1822_v29 = vpop.f32.mrb[32].mxu0  ;;  %v1863_v25 = vpop.f32.mrb[24].mxu1 }
 0x5ff   :  { %v1869_v51 = vadd.f32 %v1822_v29, %v4190_v13  ;;  %v1824_v18 = vpop.f32.mrb[33].mxu0  ;;  %v2807_v4 = vpop.f32.mrb[25].mxu1  ;;  %v1883_v19 = vadd.f32 %v4217_v57, %v1863_v25 }
 0x600   :  { %v1870_v1 = vadd.f32 %v1824_v18, %v4192_v21  ;;  %v1826_v20 = vpop.f32.mrb[34].mxu0  ;;  %v1866_v62 = vpop.f32.mrb[26].mxu1 }
 0x601   :  { %v2542_v6 = vmul.f32 -1.442695, %v1869_v51  ;;  %v1827_v9 = vpop.f32.mrb[35].mxu0  ;;  %v2808_v26 = vpop.f32.mrb[27].mxu1 }
 0x602   :  { %v2543_v16 = vmul.f32 -1.442695, %v1870_v1 }
 0x603   :  { %3106 = vpow2.f32 %v2542_v6 }
 0x604   :  { %3108 = vpow2.f32 %v2543_v16 }
 0x60d   :  { %v3107_v56 = vpop.eup %3106 }
 0x60e   :  { %v1877_v15 = vadd.f32 1.0, %v3107_v56  ;;  %v3109_v38 = vpop.eup %3108 }
 0x60f   :  { %v1878_v39 = vadd.f32 1.0, %v3109_v38 }
 0x610   :  { %3110 = vrcp.f32 %v1877_v15 }
 0x611   :  { %3112 = vrcp.f32 %v1878_v39 }
 0x61a   :  { %v3111_v13 = vpop.eup %3110 }
 0x61b   :  { %v1884_v23 = vmul.f32 %v3111_v13, %v1883_v19  ;;  %v3113_v52 = vpop.eup %3112 }
 0x61c   :  { %v1887_v50 = vsub.f32 1.0, %v3113_v52  ;;  %v1889_v7 = vmul.f32 %v3113_v52, %v4396_v2 }
 0x61d   :  { %v1885_v21 = vadd.f32 %v1884_v23, %v4204_v43  ;;  %v4488_v43 = vld [vmem:[#allocation2 + $0x170] ss:$12 sps:$4 sm:$0xff]  }
 0x61f   :  { %3114 = vtanh.f32 %v1885_v21 }
 0x629   :  { %v3115_v37 = vpop.eup %3114 }
 0x62a   :  { %v1888_v48 = vmul.f32 %v3115_v37, %v1887_v50 }
 0x62c   :  { %v1890_v27 = vadd.f32 %v1889_v7, %v1888_v48 }
 0x62e   :  { %v4452_v29 = vsel %vm1891_vm14, %v1890_v27, %v4396_v2 }
 0x62f   :  { %v1893_v25 = vpack.c.bf16 %v4452_v29, %v4452_v29 }
 0x631   :  { %1927 = vmatmul.mubr.bf16.vlgmr.msra.gmra.mrb[36].mxu0 %v1893_v25  ;;  %2826 = vmatmul.mubr.bf16.vlgmr.msra.gmra.mrb[28].mxu1 %v1893_v25 }
 0x632   :  { %2001 = vmatpush1.bf16.msra.mxu0 %v4129_v61  ;;  %2830 = vmatpush3.bf16.msra.mxu1 %v4351_v49 }
 0x633   :  { %2002 = vmatprep.subr.bf16.mxu0 %v4133_v40  ;;  %2831 = vmatprep.subr.bf16.mxu1 %v3232_v10 }
 0x634   :  { %2032 = vmatprep.mubr.bf16.mxu0 %v4667_v5  ;;  %2845 = vmatprep.mubr.msk.bf16.mxu1 %vm3233_vm8, %v3232_v10 }
 0x636   :  { %2003 = vmatpush1.bf16.msra.mxu0 %v4140_v3  ;;  %2832 = vmatpush3.bf16.msra.mxu1 %v4360_v0 }
 0x637   :  { %2004 = vmatprep.subr.bf16.mxu0 %v4144_v30  ;;  %2833 = vmatprep.subr.bf16.mxu1 %v3232_v10 }
 0x63a   :  { %2005 = vmatpush1.bf16.msra.mxu0 %v4244_v36  ;;  %2834 = vmatpush3.bf16.msra.mxu1 %v4412_v8 }
 0x63b   :  { %2006 = vmatprep.subr.bf16.mxu0 %v4248_v58  ;;  %2835 = vmatprep.subr.bf16.mxu1 %v3232_v10 }
 0x63e   :  { %2007 = vmatpush1.bf16.msra.mxu0 %v4252_v60  ;;  %2836 = vmatpush3.bf16.msra.mxu1 %v4418_v32 }
 0x63f   :  { %2008 = vmatprep.subr.bf16.mxu0 %v4256_v17  ;;  %2837 = vmatprep.subr.bf16.mxu1 %v3232_v10 }
 0x642   :  { %2009 = vmatpush1.bf16.msra.mxu0 %v4260_v31  ;;  %2838 = vmatpush3.bf16.msra.mxu1 %v4424_v46 }
 0x643   :  { %2010 = vmatprep.subr.bf16.mxu0 %v4264_v42  ;;  %2839 = vmatprep.subr.bf16.mxu1 %v3232_v10 }
 0x646   :  { %2011 = vmatpush1.bf16.msra.mxu0 %v4268_v24  ;;  %2840 = vmatpush3.bf16.msra.mxu1 %v4430_v63 }
 0x647   :  { %2012 = vmatprep.subr.bf16.mxu0 %v4272_v22  ;;  %2841 = vmatprep.subr.bf16.mxu1 %v3232_v10 }
 0x64a   :  { %2013 = vmatpush1.bf16.msra.mxu0 %v4276_v53  ;;  %2842 = vmatpush3.bf16.msra.mxu1 %v4436_v14 }
 0x64b   :  { %2014 = vmatprep.subr.bf16.mxu0 %v4280_v35  ;;  %2843 = vmatprep.subr.bf16.mxu1 %v3232_v10 }
 0x64e   :  { %2015 = vmatpush1.bf16.msra.mxu0 %v4284_v59  ;;  %2844 = vmatpush3.bf16.msra.mxu1 %v4488_v43 }
 0x64f   :  { %2106 = vmatprep.subr.bf16.mxu0 %v4335_v41  ;;  %2849 = vmatprep.subr.bf16.mxu1 %v3232_v10 }
 0x704   :  { %v1928_v2 = vpop.f32.mrb[36].mxu0  ;;  %v1969_v51 = vpop.f32.mrb[28].mxu1 }
 0x705   :  { %v1975_v18 = vadd.f32 %v1928_v2, %v4194_v28  ;;  %v1930_v4 = vpop.f32.mrb[37].mxu0  ;;  %v2827_v1 = vpop.f32.mrb[29].mxu1  ;;  %v1989_v19 = vadd.f32 %v4217_v57, %v1969_v51  ;;  %v3021_v2 = vld [vmem:[%s4647_s4 + $0x48] sm:$0xff]   ;;  %v3022_v51 = vld [vmem:[%s4647_s4 + $0x10] sm:$0xff]  }
 0x706   :  { %v1976_v20 = vadd.f32 %v1930_v4, %v4196_v55  ;;  %v1932_v62 = vpop.f32.mrb[38].mxu0  ;;  %v1972_v6 = vpop.f32.mrb[30].mxu1  ;;  %v3024_v4 = vld [vmem:[%s4647_s4 + $0x18] sm:$0xff]  }
 0x707   :  { %v2544_v9 = vmul.f32 -1.442695, %v1975_v18  ;;  %v1933_v26 = vpop.f32.mrb[39].mxu0  ;;  %v2828_v16 = vpop.f32.mrb[31].mxu1  ;;  %v3023_v18 = vld [vmem:[%s4647_s4 + $0x50] sm:$0xff]   ;;  %v3025_v1 = vld [vmem:[%s4647_s4 + $0x58] sm:$0xff]  }
 0x708   :  { %v2545_v56 = vmul.f32 -1.442695, %v1976_v20  ;;  %v3026_v20 = vld [vmem:[%s4647_s4 + $0x20] sm:$0xff]   ;;  %v3028_v6 = vld [vmem:[%s4647_s4 + $0x28] sm:$0xff]   ;;  %v3030_v26 = vld [vmem:[%s4647_s4 + $0x30] sm:$0xff]  }
 0x709   :  { %3116 = vpow2.f32 %v2544_v9  ;;  %v3027_v62 = vld [vmem:[%s4647_s4 + $0x60] sm:$0xff]   ;;  %v3029_v9 = vld [vmem:[%s4647_s4 + $0x68] sm:$0xff]   ;;  %v3031_v16 = vld [vmem:[%s4647_s4 + $0x70] sm:$0xff]  }
 0x70a   :  { %3118 = vpow2.f32 %v2545_v56  ;;  %v3032_v56 = vld [vmem:[%s4647_s4 + $0x38] sm:$0xff]  }
 0x713   :  { %v3117_v15 = vpop.eup %3116 }
 0x714   :  { %v1983_v41 = vadd.f32 1.0, %v3117_v15  ;;  %v3119_v38 = vpop.eup %3118  ;;  %v2211_v15 = vld [vmem:[%s4644_s1] sm:$0xff] }
 0x715   :  { %v1984_v39 = vadd.f32 1.0, %v3119_v38  ;;  %v2212_v38 = vpack.c.bf16 %v2211_v15, %v2211_v15 }
 0x716   :  { %3120 = vrcp.f32 %v1983_v41  ;;  %v3033_v41 = vld [vmem:[%s4647_s4 + $0x78] sm:$0xff]  }
 0x717   :  { %3122 = vrcp.f32 %v1984_v39 }
 0x720   :  { %v3121_v28 = vpop.eup %3120 }
 0x721   :  { %v1990_v13 = vmul.f32 %v3121_v28, %v1989_v19  ;;  %v3123_v23 = vpop.eup %3122 }
 0x722   :  { %v1993_v21 = vsub.f32 1.0, %v3123_v23  ;;  %v1995_v50 = vmul.f32 %v3123_v23, %v4452_v29 }
 0x723   :  { %v1991_v55 = vadd.f32 %v1990_v13, %v4212_v33 }
 0x725   :  { %3124 = vtanh.f32 %v1991_v55 }
 0x72f   :  { %v3125_v52 = vpop.eup %3124 }
 0x730   :  { %v1994_v37 = vmul.f32 %v3125_v52, %v1993_v21 }
 0x732   :  { %v1996_v7 = vadd.f32 %v1995_v50, %v1994_v37 }
 0x734   :  { %v4500_v48 = vsel %vm1997_vm15, %v1996_v7, %v4452_v29 }
 0x735   :  { %v1999_v27 = vpack.c.bf16 %v4500_v48, %v4500_v48 }
 0x737   :  { %2033 = vmatmul.mubr.bf16.vlgmr.msra.gmra.mrb[40].mxu0 %v1999_v27  ;;  %2846 = vmatmul.mubr.bf16.vlgmr.msra.gmra.mrb[32].mxu1 %v1999_v27 }
 0x738   :  { %2107 = vmatpush1.bf16.msra.mxu0 %v4129_v61  ;;  %2850 = vmatpush3.bf16.msra.mxu1 %v4351_v49 }
 0x739   :  { %2108 = vmatprep.subr.bf16.mxu0 %v4133_v40  ;;  %2851 = vmatprep.subr.bf16.mxu1 %v3232_v10 }
 0x73a   :  { %2138 = vmatprep.mubr.bf16.mxu0 %v4667_v5  ;;  %2865 = vmatprep.mubr.msk.bf16.mxu1 %vm3233_vm8, %v3232_v10 }
 0x73c   :  { %2109 = vmatpush1.bf16.msra.mxu0 %v4140_v3  ;;  %2852 = vmatpush3.bf16.msra.mxu1 %v4360_v0 }
 0x73d   :  { %2110 = vmatprep.subr.bf16.mxu0 %v4144_v30  ;;  %2853 = vmatprep.subr.bf16.mxu1 %v3232_v10 }
 0x740   :  { %2111 = vmatpush1.bf16.msra.mxu0 %v4244_v36  ;;  %2854 = vmatpush3.bf16.msra.mxu1 %v4412_v8 }
 0x741   :  { %2112 = vmatprep.subr.bf16.mxu0 %v4248_v58  ;;  %2855 = vmatprep.subr.bf16.mxu1 %v3232_v10 }
 0x744   :  { %2113 = vmatpush1.bf16.msra.mxu0 %v4252_v60  ;;  %2856 = vmatpush3.bf16.msra.mxu1 %v4418_v32 }
 0x745   :  { %2114 = vmatprep.subr.bf16.mxu0 %v4256_v17  ;;  %2857 = vmatprep.subr.bf16.mxu1 %v3232_v10 }
 0x748   :  { %2115 = vmatpush1.bf16.msra.mxu0 %v4260_v31  ;;  %2858 = vmatpush3.bf16.msra.mxu1 %v4424_v46 }
 0x749   :  { %2116 = vmatprep.subr.bf16.mxu0 %v4264_v42  ;;  %2859 = vmatprep.subr.bf16.mxu1 %v3232_v10 }
 0x74c   :  { %2117 = vmatpush1.bf16.msra.mxu0 %v4268_v24  ;;  %2860 = vmatpush3.bf16.msra.mxu1 %v4430_v63 }
 0x74d   :  { %2118 = vmatprep.subr.bf16.mxu0 %v4272_v22  ;;  %2861 = vmatprep.subr.bf16.mxu1 %v3232_v10 }
 0x750   :  { %2119 = vmatpush1.bf16.msra.mxu0 %v4276_v53  ;;  %2862 = vmatpush3.bf16.msra.mxu1 %v4436_v14 }
 0x751   :  { %2120 = vmatprep.subr.bf16.mxu0 %v4280_v35  ;;  %2863 = vmatprep.subr.bf16.mxu1 %v3232_v10 }
 0x754   :  { %2121 = vmatpush1.bf16.msra.mxu0 %v4284_v59  ;;  %2864 = vmatpush3.bf16.msra.mxu1 %v4488_v43  ;;  %v3020_v43 = vld [vmem:[%s4647_s4 + $0x8] sm:$0xff]  }
 0x755   :  { %2889 = vmatprep.subr.bf16.mxu1 %v3232_v10  ;;  %2869 = vmatprep.subr.bf16.mxu0 %v3232_v10 }
 0x80a   :  { %v2034_v61 = vpop.f32.mrb[40].mxu0  ;;  %v2075_v40 = vpop.f32.mrb[32].mxu1 }
 0x80b   :  { %v2081_v3 = vadd.f32 %v2034_v61, %v4198_v34  ;;  %v2036_v30 = vpop.f32.mrb[41].mxu0  ;;  %v2847_v33 = vpop.f32.mrb[33].mxu1  ;;  %v2095_v5 = vadd.f32 %v4217_v57, %v2075_v40 }
 0x80c   :  { %v2082_v36 = vadd.f32 %v2036_v30, %v4202_v44  ;;  %v2038_v58 = vpop.f32.mrb[42].mxu0  ;;  %v2078_v60 = vpop.f32.mrb[34].mxu1 }
 0x80d   :  { %v2546_v17 = vmul.f32 -1.442695, %v2081_v3  ;;  %v2039_v31 = vpop.f32.mrb[43].mxu0  ;;  %v2848_v42 = vpop.f32.mrb[35].mxu1 }
 0x80e   :  { %v2547_v24 = vmul.f32 -1.442695, %v2082_v36  ;;  %v3173_v31 = vld [vmem:[%s4645_s2] sm:$0xff] }
 0x80f   :  { %3126 = vpow2.f32 %v2546_v17  ;;  %vm2209_vm1 = vcmp.gt.f32.partialorder %v3173_v31, 7.0 }
 0x810   :  { %3128 = vpow2.f32 %v2547_v24 }
 0x819   :  { %v3127_v22 = vpop.eup %3126 }
 0x81a   :  { %v2089_v53 = vadd.f32 1.0, %v3127_v22  ;;  %v3129_v35 = vpop.eup %3128 }
 0x81b   :  { %v2090_v59 = vadd.f32 1.0, %v3129_v35 }
 0x81c   :  { %3130 = vrcp.f32 %v2089_v53 }
 0x81d   :  { %3132 = vrcp.f32 %v2090_v59  ;;  %v2582_v59 = vld [vmem:[%s4645_s2 + $0xb] ss:$0 sm:$0xff] }
 0x826   :  { %v3131_v34 = vpop.eup %3130 }
 0x827   :  { %v2096_v49 = vmul.f32 %v3131_v34, %v2095_v5  ;;  %v3133_v0 = vpop.eup %3132 }
 0x828   :  { %v2099_v8 = vsub.f32 1.0, %v3133_v0  ;;  %v2101_v46 = vmul.f32 %v3133_v0, %v4500_v48 }
 0x829   :  { %v2097_v44 = vadd.f32 %v4200_v11, %v2096_v49  ;;  %v3018_v11 = vld [vmem:[%s4647_s4] sm:$0xff]  }
 0x82b   :  { %3134 = vtanh.f32 %v2097_v44 }
 0x835   :  { %v3135_v32 = vpop.eup %3134 }
 0x836   :  { %v2100_v63 = vmul.f32 %v3135_v32, %v2099_v8 }
 0x838   :  { %v2102_v14 = vadd.f32 %v2101_v46, %v2100_v63 }
 0x83a   :  { %v4546_v29 = vsel %vm2103_vm0, %v2102_v14, %v4500_v48 }
 0x83b   :  { %v2105_v25 = vpack.c.bf16 %v4546_v29, %v4546_v29 }
 0x83d   :  { %2139 = vmatmul.mubr.bf16.vlgmr.msra.gmra.mrb[44].mxu0 %v2105_v25  ;;  %2866 = vmatmul.mubr.bf16.vlgmr.msra.gmra.mrb[36].mxu1 %v2105_v25 }
 0x83e   :  { %2905 = vmatprep.mubr.msk.bf16.mxu1 %vm3233_vm8, %v3232_v10  ;;  %2885 = vmatprep.mubr.msk.bf16.mxu0 %vm3233_vm8, %v3232_v10 }
 0x83f   :  { %2890 = vmatpush3.bf16.msra.mxu1 %v3018_v11  ;;  %2870 = vmatpush3.bf16.msra.mxu0 %v3019_v54 }
 0x840   :  { %2891 = vmatprep.subr.bf16.mxu1 %v3232_v10  ;;  %2871 = vmatprep.subr.bf16.mxu0 %v3232_v10 }
 0x843   :  { %2892 = vmatpush3.bf16.msra.mxu1 %v3020_v43  ;;  %2872 = vmatpush3.bf16.msra.mxu0 %v3021_v2 }
 0x844   :  { %2893 = vmatprep.subr.bf16.mxu1 %v3232_v10  ;;  %2873 = vmatprep.subr.bf16.mxu0 %v3232_v10 }
 0x847   :  { %2894 = vmatpush3.bf16.msra.mxu1 %v3022_v51  ;;  %2874 = vmatpush3.bf16.msra.mxu0 %v3023_v18 }
 0x848   :  { %2895 = vmatprep.subr.bf16.mxu1 %v3232_v10  ;;  %2875 = vmatprep.subr.bf16.mxu0 %v3232_v10 }
 0x84b   :  { %2896 = vmatpush3.bf16.msra.mxu1 %v3024_v4  ;;  %2876 = vmatpush3.bf16.msra.mxu0 %v3025_v1 }
 0x84c   :  { %2897 = vmatprep.subr.bf16.mxu1 %v3232_v10  ;;  %2877 = vmatprep.subr.bf16.mxu0 %v3232_v10 }
 0x84f   :  { %2898 = vmatpush3.bf16.msra.mxu1 %v3026_v20  ;;  %2878 = vmatpush3.bf16.msra.mxu0 %v3027_v62 }
 0x850   :  { %2899 = vmatprep.subr.bf16.mxu1 %v3232_v10  ;;  %2879 = vmatprep.subr.bf16.mxu0 %v3232_v10 }
 0x853   :  { %2900 = vmatpush3.bf16.msra.mxu1 %v3028_v6  ;;  %2880 = vmatpush3.bf16.msra.mxu0 %v3029_v9 }
 0x854   :  { %2901 = vmatprep.subr.bf16.mxu1 %v3232_v10  ;;  %2881 = vmatprep.subr.bf16.mxu0 %v3232_v10 }
 0x857   :  { %2902 = vmatpush3.bf16.msra.mxu1 %v3030_v26  ;;  %2882 = vmatpush3.bf16.msra.mxu0 %v3031_v16 }
 0x858   :  { %2903 = vmatprep.subr.bf16.mxu1 %v3232_v10  ;;  %2883 = vmatprep.subr.bf16.mxu0 %v3232_v10 }
 0x85b   :  { %2904 = vmatpush3.bf16.msra.mxu1 %v3032_v56  ;;  %2884 = vmatpush3.bf16.msra.mxu0 %v3033_v41 }
 0x85e   :  { %2906 = vmatmul.mubr.bf16.vlgmr.msra.gmra.mrb[40].mxu1 %v2212_v38 }
 0x910   :  { %v2140_v39 = vpop.f32.mrb[44].mxu0  ;;  %v2181_v19 = vpop.f32.mrb[36].mxu1 }
 0x911   :  { %v2187_v28 = vadd.f32 %v2140_v39, %v4206_v47  ;;  %v2142_v13 = vpop.f32.mrb[45].mxu0  ;;  %v2867_v55 = vpop.f32.mrb[37].mxu1  ;;  %v2201_v3 = vadd.f32 %v4217_v57, %v2181_v19 }
 0x912   :  { %v2188_v23 = vadd.f32 %v2142_v13, %v4210_v45  ;;  %v2144_v21 = vpop.f32.mrb[46].mxu0  ;;  %v2184_v52 = vpop.f32.mrb[38].mxu1 }
 0x913   :  { %v2548_v50 = vmul.f32 -1.442695, %v2187_v28  ;;  %v2145_v37 = vpop.f32.mrb[47].mxu0  ;;  %v2868_v7 = vpop.f32.mrb[39].mxu1 }
 0x914   :  { %v2549_v48 = vmul.f32 -1.442695, %v2188_v23 }
 0x915   :  { %3136 = vpow2.f32 %v2548_v50 }
 0x916   :  { %3138 = vpow2.f32 %v2549_v48 }
 0x91f   :  { %v3137_v27 = vpop.eup %3136 }
 0x920   :  { %v2195_v10 = vadd.f32 1.0, %v3137_v27  ;;  %v3139_v61 = vpop.eup %3138 }
 0x921   :  { %v2196_v40 = vadd.f32 1.0, %v3139_v61 }
 0x922   :  { %3140 = vrcp.f32 %v2195_v10 }
 0x923   :  { %3142 = vrcp.f32 %v2196_v40 }
 0x92c   :  { %v3141_v47 = vpop.eup %3140 }
 0x92d   :  { %v2202_v30 = vmul.f32 %v3141_v47, %v2201_v3  ;;  %v3143_v33 = vpop.eup %3142 }
 0x92e   :  { %v2205_v36 = vsub.f32 1.0, %v3143_v33  ;;  %v2207_v17 = vmul.f32 %v3143_v33, %v4546_v29 }
 0x92f   :  { %v2203_v45 = vadd.f32 %v4208_v12, %v2202_v30 }
 0x931   :  { %3144 = vtanh.f32 %v2203_v45  ;;  %v2417_v22 = vpop.f32.mrb[40].mxu1 }
 0x932   :  { %v2907_v53 = vpop.f32.mrb[41].mxu1 }
 0x933   :  { %v2420_v12 = vpop.f32.mrb[42].mxu1 }
 0x934   :  { %v2908_v35 = vpop.f32.mrb[43].mxu1 }
 0x93b   :  { %v3145_v58 = vpop.eup %3144 }
 0x93c   :  { %v2206_v60 = vmul.f32 %v3145_v58, %v2205_v36 }
 0x93e   :  { %v2208_v42 = vadd.f32 %v2207_v17, %v2206_v60 }
 0x940   :  { %v2210_v57 = vsel %vm2209_vm1, %v2208_v42, %v4546_v29 }
 0x941   :  { %v2229_v24 = vpack.c.bf16 %v2210_v57, %v2210_v57 }
 0x943   :  { %2886 = vmatmul.mubr.bf16.vlgmr.msra.gmra.mrb[48].mxu0 %v2229_v24 }
 0xa16   :  { %v2329_v5 = vpop.f32.mrb[48].mxu0 }
 0xa17   :  { %v2418_v34 = vadd.f32 %v2417_v22, %v2329_v5  ;;  %v2887_v49 = vpop.f32.mrb[49].mxu0 }
 0xa18   :  { %v2332_v44 = vpop.f32.mrb[50].mxu0 }
 0xa19   :  { %v2427_v0 = vadd.f32 %v2582_v59, %v2418_v34  ;;  %v2888_v8 = vpop.f32.mrb[51].mxu0 }
 0xa1b   :  { %2429 = vst.msk [vmem:[#allocation5] sm:$0xff] %vm2428_vm2, %v2427_v0 }
 0xa1c   :  { %3207 = shalt.err (!%p3204_p12)
}
 0xa1d   :  { %s3208_s20 = scalar_lea.hbm %s4648_s5, 128 }
 0xa1e   :  { %p3209_p13 = scmp.ne.s32.totalorder %s4648_s5, %s3208_s20  ;;  %p3212_p0 = scmp.lt.u32.totalorder %s3208_s20, %s4648_s5 }
 0xa20   :  { %p3214_p1 = pnand %p3212_p0, %p3209_p13 }
 0xa22   :  { %3217 = shalt.err (!%p3214_p1)
}
 0xa23   :  { %2439 = dma.vmem_to_hbm [thread:$0]  %s2437_s17, 128, %s4648_s5, [#allocation4]  }
 0xa24   :  { %3220 = dma.done.wait [#allocation4], 128  }
 0xa25   :  { %3221 = vsyncadd [#allocation4], 4294967168 }
 0xa26   :  { %2443 = vsyncpa [#allocation3], 1 }
 0xa27   :  { %2444 = vsyncpa [#allocation4], 1 }

</bundles_post_ra>
